<compile_context>
chip_gen: v5e
topology: v5e:2x2
jax: 0.10.0
libtpu: 0.0.40
codegen_flags: <defaults>
</compile_context>

<pallas_src>
import math
import functools

import jax
import jax.numpy as jnp
from jax import lax
from jax.experimental import pallas as pl
from jax.experimental.pallas import tpu as pltpu


# --------------------------------------------------------------------------- #
# Small helpers
# --------------------------------------------------------------------------- #
def _round_up(n, m):
    return ((n + m - 1) // m) * m


def _pick_batch_tile(B, S, min_rows=128):
    """Smallest divisor of B whose row count (bt*S) feeds the MXU well."""
    for bt in range(1, B + 1):
        if B % bt == 0 and bt * S >= min_rows:
            return bt
    return B


def _layernorm(x, w, b, eps=1e-5):
    mu = jnp.mean(x, axis=-1, keepdims=True)
    xc = x - mu
    var = jnp.mean(xc * xc, axis=-1, keepdims=True)
    inv = lax.rsqrt(var + eps)
    return xc * inv * w + b


# --------------------------------------------------------------------------- #
# Fused encoder-stack kernel: grid = (batch_tiles, nlayers)
#   activation lives in VMEM scratch across the (inner, "arbitrary") layer axis
# --------------------------------------------------------------------------- #
def encoder_stack_kernel(x_ref,
                         wq_ref, wk_ref, wv_ref, bq_ref, bk_ref, bv_ref,
                         wo_ref, bo_ref, ln1w_ref, ln1b_ref,
                         w1_ref, b1_ref, w2_ref, b2_ref, ln2w_ref, ln2b_ref,
                         o_ref, h_ref, *, nhead):
    layer = pl.program_id(1)
    nlayers = pl.num_programs(1)

    # Load the input activation into the resident f32 scratch at the first layer.
    @pl.when(layer == 0)
    def _():
        h_ref[...] = x_ref[...].astype(jnp.float32)

    x = h_ref[...]                                  # (Bt, S, D) f32, resident
    Bt, S, D = x.shape
    hd = D // nhead
    scale = 1.0 / math.sqrt(hd)
    cdt = w1_ref.dtype                              # matmul compute dtype (bf16)

    x2 = x.reshape(Bt * S, D)                       # fold batch into M
    x2c = x2.astype(cdt)

    # Causal mask built in-kernel (no HBM traffic); finite negative -> NaN-safe.
    qi = lax.broadcasted_iota(jnp.int32, (S, S), 0)
    kj = lax.broadcasted_iota(jnp.int32, (S, S), 1)
    causal = (kj <= qi)[None, :, :]                 # (1, S, S)

    # ---- multi-head self-attention ---------------------------------------- #
    # Weights are pre-split per head on the host: slicing refs on leading dims
    # is free; no lane-unaligned activation slices, no concat (out-proj is
    # accumulated per head).
    attn_acc = jnp.zeros((Bt * S, D), jnp.float32)
    for h in range(nhead):                          # static unrolled loop
        qh = (jnp.dot(x2c, wq_ref[0, h], preferred_element_type=jnp.float32)
              + bq_ref[0, h])
        kh = (jnp.dot(x2c, wk_ref[0, h], preferred_element_type=jnp.float32)
              + bk_ref[0, h])
        vh = (jnp.dot(x2c, wv_ref[0, h], preferred_element_type=jnp.float32)
              + bv_ref[0, h])
        qb = qh.reshape(Bt, S, hd).astype(cdt)
        kb = kh.reshape(Bt, S, hd).astype(cdt)
        vb = vh.reshape(Bt, S, hd).astype(cdt)

        s = jnp.einsum('bqd,bkd->bqk', qb, kb,
                       preferred_element_type=jnp.float32) * scale
        s = jnp.where(causal, s, -1e30)
        m = jnp.max(s, axis=-1, keepdims=True)
        p = jnp.exp(s - m)
        denom = jnp.sum(p, axis=-1, keepdims=True)
        attn = p * pl.reciprocal(denom, approx=True)      # EUP, nearly free

        ctx = jnp.einsum('bqk,bkd->bqd', attn.astype(cdt), vb,
                         preferred_element_type=jnp.float32)   # (Bt, S, hd)
        attn_acc = attn_acc + jnp.dot(ctx.reshape(Bt * S, hd).astype(cdt),
                                      wo_ref[0, h],
                                      preferred_element_type=jnp.float32)
    attn_out = attn_acc + bo_ref[0]

    # ---- residual + layernorm 1 -------------------------------------------- #
    y = _layernorm(x2 + attn_out, ln1w_ref[0], ln1b_ref[0])

    # ---- feed-forward (exact GELU, matching activation='gelu') -------------- #
    h1 = (jnp.dot(y.astype(cdt), w1_ref[0], preferred_element_type=jnp.float32)
          + b1_ref[0])
    g = 0.5 * h1 * (1.0 + lax.erf(h1 * (1.0 / math.sqrt(2.0))))
    h2 = (jnp.dot(g.astype(cdt), w2_ref[0], preferred_element_type=jnp.float32)
          + b2_ref[0])

    # ---- residual + layernorm 2 -------------------------------------------- #
    z = _layernorm(y + h2, ln2w_ref[0], ln2b_ref[0]).reshape(Bt, S, D)

    h_ref[...] = z                                  # stays resident for next layer

    @pl.when(layer == nlayers - 1)
    def _():
        o_ref[...] = z.astype(o_ref.dtype)


def prepare_encoder_params(layers, nhead, compute_dtype=jnp.bfloat16):
    """Stack per-layer params into (L, ...), pre-transpose matmul weights,
    pre-split attention projections per head, cast matmul weights to bf16."""
    D = layers[0]['out_w'].shape[0]
    H = nhead
    hd = D // H

    def per_layer(lp):
        in_w = lp['in_w']                                   # (3D, D) torch layout
        wq, wk, wv = in_w[:D], in_w[D:2 * D], in_w[2 * D:]
        in_b = lp['in_b'].reshape(-1)
        bq, bk, bv = in_b[:D], in_b[D:2 * D], in_b[2 * D:]

        def wsplit(w):   # (D, D) torch -> x @ W^T, split output cols by head
            return w.T.reshape(D, H, hd).transpose(1, 0, 2).astype(compute_dtype)

        def bsplit(b):   # (D,) -> (H, 1, hd)
            return b.reshape(H, 1, hd).astype(jnp.float32)

        return dict(
            wq=wsplit(wq), wk=wsplit(wk), wv=wsplit(wv),
            bq=bsplit(bq), bk=bsplit(bk), bv=bsplit(bv),
            # out_proj: ctx @ Wo^T == sum_h ctx_h @ (Wo^T rows of head h)
            wo=lp['out_w'].T.reshape(H, hd, D).astype(compute_dtype),
            bo=lp['out_b'].reshape(1, D).astype(jnp.float32),
            ln1_w=lp['ln1_w'].reshape(1, D).astype(jnp.float32),
            ln1_b=lp['ln1_b'].reshape(1, D).astype(jnp.float32),
            w1=lp['ff1_w'].T.astype(compute_dtype),          # (D, nhid)
            b1=lp['ff1_b'].reshape(1, -1).astype(jnp.float32),
            w2=lp['ff2_w'].T.astype(compute_dtype),          # (nhid, D)
            b2=lp['ff2_b'].reshape(1, -1).astype(jnp.float32),
            ln2_w=lp['ln2_w'].reshape(1, D).astype(jnp.float32),
            ln2_b=lp['ln2_b'].reshape(1, D).astype(jnp.float32),
        )

    per = [per_layer(lp) for lp in layers]
    return {k: jnp.stack([p[k] for p in per], axis=0) for k in per[0]}


def transformer_encoder_stack(x, stacked, nhead):
    B, S, D = x.shape
    L = stacked['wq'].shape[0]
    bt = _pick_batch_tile(B, S)
    grid = (B // bt, L)

    names = ['wq', 'wk', 'wv', 'bq', 'bk', 'bv', 'wo', 'bo',
             'ln1_w', 'ln1_b', 'w1', 'b1', 'w2', 'b2', 'ln2_w', 'ln2_b']
    params = [stacked[n] for n in names]

    def layer_map(nd):
        return lambda b, l: (l,) + (0,) * (nd - 1)

    in_specs = [pl.BlockSpec((bt, S, D), lambda b, l: (b, 0, 0))]
    in_specs += [pl.BlockSpec((1,) + p.shape[1:], layer_map(p.ndim)) for p in params]

    return pl.pallas_call(
        functools.partial(encoder_stack_kernel, nhead=nhead),
        out_shape=jax.ShapeDtypeStruct((B, S, D), jnp.float32),
        grid=grid,
        in_specs=in_specs,
        out_specs=pl.BlockSpec((bt, S, D), lambda b, l: (b, 0, 0)),
        scratch_shapes=[pltpu.VMEM((bt, S, D), jnp.float32)],
        compiler_params=pltpu.CompilerParams(
            dimension_semantics=("parallel", "arbitrary"),
            vmem_limit_bytes=64 * 1024 * 1024),
    )(x, *params)


# --------------------------------------------------------------------------- #
# Decoder kernel: tag head over positions [:-1] + cls head over last position
#   lane-padded outputs (dense stores), last position dropped BEFORE the matmul
# --------------------------------------------------------------------------- #
def decoder_kernel(x_ref, tagw_ref, tagb_ref, clsw_ref, clsb_ref,
                   tag_o_ref, cls_o_ref):
    x = x_ref[0]                                    # (S, D) f32
    S, D = x.shape
    cdt = tagw_ref.dtype

    xt = x[:S - 1, :].astype(cdt)                   # drop glue position up front
    tag = (jnp.dot(xt, tagw_ref[...], preferred_element_type=jnp.float32)
           + tagb_ref[...])
    tag_o_ref[0] = tag

    xl = x[S - 1:S, :].astype(cdt)                  # (1, D) last position
    cls = (jnp.dot(xl, clsw_ref[...], preferred_element_type=jnp.float32)
           + clsb_ref[...])
    cls_o_ref[0] = cls


def decode(x, tag_w, tag_b, cls_w, cls_b, compute_dtype=jnp.bfloat16):
    B, S, D = x.shape
    ntag, ncls = tag_w.shape[0], cls_w.shape[0]
    ntag_p = _round_up(ntag, 128)
    ncls_p = _round_up(ncls, 128)

    tagw_t = jnp.pad(tag_w.T.astype(compute_dtype), ((0, 0), (0, ntag_p - ntag)))
    tagb_p = jnp.pad(tag_b.reshape(1, ntag).astype(jnp.float32),
                     ((0, 0), (0, ntag_p - ntag)))
    clsw_t = jnp.pad(cls_w.T.astype(compute_dtype), ((0, 0), (0, ncls_p - ncls)))
    clsb_p = jnp.pad(cls_b.reshape(1, ncls).astype(jnp.float32),
                     ((0, 0), (0, ncls_p - ncls)))

    tag_all, cls_out = pl.pallas_call(
        decoder_kernel,
        out_shape=(jax.ShapeDtypeStruct((B, S - 1, ntag_p), jnp.float32),
                   jax.ShapeDtypeStruct((B, 1, ncls_p), jnp.float32)),
        grid=(B,),
        in_specs=[pl.BlockSpec((1, S, D), lambda b: (b, 0, 0)),
                  pl.BlockSpec((D, ntag_p), lambda b: (0, 0)),
                  pl.BlockSpec((1, ntag_p), lambda b: (0, 0)),
                  pl.BlockSpec((D, ncls_p), lambda b: (0, 0)),
                  pl.BlockSpec((1, ncls_p), lambda b: (0, 0))],
        out_specs=(pl.BlockSpec((1, S - 1, ntag_p), lambda b: (b, 0, 0)),
                   pl.BlockSpec((1, 1, ncls_p), lambda b: (b, 0, 0))),
        compiler_params=pltpu.CompilerParams(
            dimension_semantics=("parallel",),
            vmem_limit_bytes=64 * 1024 * 1024),
    )(x, tagw_t, tagb_p, clsw_t, clsb_p)

    return tag_all[:, :, :ntag], cls_out[:, 0, :ncls]


# --------------------------------------------------------------------------- #
# Glue: parameters, positional encoding, forward pass
# --------------------------------------------------------------------------- #
def positional_encoding(max_len, d_model):
    position = jnp.arange(max_len, dtype=jnp.float32)[:, None]
    div_term = jnp.exp(jnp.arange(0, d_model, 2, dtype=jnp.float32)
                       * (-math.log(10000.0) / d_model))
    pe = jnp.zeros((max_len, d_model), jnp.float32)
    pe = pe.at[:, 0::2].set(jnp.sin(position * div_term))
    pe = pe.at[:, 1::2].set(jnp.cos(position * div_term))
    return pe


def init_params(key, ntoken, nclstoken, ntagtoken, ninp, nhead, nhid, nlayers):
    del nhead
    keys = jax.random.split(key, 3 + nlayers)
    initrange = 0.1
    params = {
        'emb': jax.random.uniform(keys[0], (ntoken, ninp), jnp.float32,
                                  -initrange, initrange),
        'tag_w': jax.random.uniform(keys[1], (ntagtoken, ninp), jnp.float32,
                                    -initrange, initrange),
        'tag_b': jnp.zeros((ntagtoken,), jnp.float32),
        'cls_w': jax.random.uniform(keys[2], (nclstoken, ninp), jnp.float32,
                                    -initrange, initrange),
        'cls_b': jnp.zeros((nclstoken,), jnp.float32),
        'pe': positional_encoding(5000, ninp),      # hoisted: computed once
    }
    layers = []
    for l in range(nlayers):
        lk = jax.random.split(keys[3 + l], 4)
        bnd = math.sqrt(6.0 / (4 * ninp))           # xavier-uniform-like, deterministic
        layers.append(dict(
            in_w=jax.random.uniform(lk[0], (3 * ninp, ninp), jnp.float32, -bnd, bnd),
            in_b=jnp.zeros((3 * ninp,), jnp.float32),
            out_w=jax.random.uniform(lk[1], (ninp, ninp), jnp.float32, -0.1, 0.1),
            out_b=jnp.zeros((ninp,), jnp.float32),
            ln1_w=jnp.ones((ninp,), jnp.float32),
            ln1_b=jnp.zeros((ninp,), jnp.float32),
            ff1_w=jax.random.uniform(lk[2], (nhid, ninp), jnp.float32, -0.1, 0.1),
            ff1_b=jnp.zeros((nhid,), jnp.float32),
            ff2_w=jax.random.uniform(lk[3], (ninp, nhid), jnp.float32, -0.1, 0.1),
            ff2_b=jnp.zeros((ninp,), jnp.float32),
            ln2_w=jnp.ones((ninp,), jnp.float32),
            ln2_b=jnp.zeros((ninp,), jnp.float32),
        ))
    params['layers'] = layers
    return params


def transformer_forward(params, src, nhead, compute_dtype=jnp.bfloat16):
    B, S = src.shape
    D = params['emb'].shape[1]

    # Embedding gather + sqrt(ninp) scale + positional encoding (plain-JAX glue;
    # a random-access gather has no cheap Pallas win at these sizes).
    x = params['emb'][src] * math.sqrt(D)                    # (B, S, D)
    # Faithful to the PyTorch code as written: pe is indexed by the batch dim
    # (pos_encoder is applied before `transpose(0, 1)`).
    x = x + params['pe'][:B][:, None, :]
    # dropout (p=0.5 / 0.1) -> identity in eval mode

    stacked = prepare_encoder_params(params['layers'], nhead, compute_dtype)
    x = transformer_encoder_stack(x, stacked, nhead)

    return decode(x, params['tag_w'], params['tag_b'],
                  params['cls_w'], params['cls_b'], compute_dtype)


# --------------------------------------------------------------------------- #
if __name__ == "__main__":
    ntoken, nclstoken, ntagtoken = 100, 5, 7
    ninp, nhead, nhid, nlayers = 32, 2, 64, 2
    B, S = 2, 8

    key = jax.random.PRNGKey(0)
    pkey, dkey = jax.random.split(key)
    params = init_params(pkey, ntoken, nclstoken, ntagtoken, ninp, nhead, nhid, nlayers)
    src = jax.random.randint(dkey, (B, S), 1, ntoken, dtype=jnp.int32)

    fwd = jax.jit(functools.partial(transformer_forward, nhead=nhead))
    tag_out, cls_out = fwd(params, src)
    jax.block_until_ready((tag_out, cls_out))

    assert tag_out.shape == (B, S - 1, ntagtoken), tag_out.shape
    assert cls_out.shape == (B, nclstoken), cls_out.shape
    assert bool(jnp.all(jnp.isfinite(tag_out))) and bool(jnp.all(jnp.isfinite(cls_out)))
    print("KERNEL_OK")
</pallas_src>

<mosaic_0001>
module attributes {stable_mosaic.version = 11 : i64} {
  func.func @decoder_kernel(%arg0: i32, %arg1: memref<1x8x32xf32, #tpu.memory_space<vmem>>, %arg2: memref<32x128xbf16, #tpu.memory_space<vmem>>, %arg3: memref<1x128xf32, #tpu.memory_space<vmem>>, %arg4: memref<32x128xbf16, #tpu.memory_space<vmem>>, %arg5: memref<1x128xf32, #tpu.memory_space<vmem>>, %arg6: memref<1x7x128xf32, #tpu.memory_space<vmem>>, %arg7: memref<1x1x128xf32, #tpu.memory_space<vmem>>) attributes {dimension_semantics = [#tpu.dimension_semantics<parallel>], iteration_bounds = array<i64: 2>, scalar_prefetch = 0 : i64, scratch_operands = 0 : i64, tpu.core_type = #tpu.core_type<tc>, window_params = [{transform_indices = @transform_0, window_bounds = array<i64: 1, 8, 32>}, {pipeline_mode = #tpu.pipeline_mode<synchronous>, transform_indices = @transform_1, window_bounds = array<i64: 32, 128>}, {pipeline_mode = #tpu.pipeline_mode<synchronous>, transform_indices = @transform_2, window_bounds = array<i64: 1, 128>}, {pipeline_mode = #tpu.pipeline_mode<synchronous>, transform_indices = @transform_3, window_bounds = array<i64: 32, 128>}, {pipeline_mode = #tpu.pipeline_mode<synchronous>, transform_indices = @transform_4, window_bounds = array<i64: 1, 128>}, {transform_indices = @transform_5, window_bounds = array<i64: 1, 7, 128>}, {transform_indices = @transform_6, window_bounds = array<i64: 1, 1, 128>}]} {
    %c0 = arith.constant 0 : index
    %c0_0 = arith.constant 0 : index
    %c0_1 = arith.constant 0 : index
    %0 = vector.load %arg1[%c0, %c0_0, %c0_1] : memref<1x8x32xf32, #tpu.memory_space<vmem>>, vector<1x8x32xf32>
    %1 = vector.shape_cast %0 : vector<1x8x32xf32> to vector<8x32xf32>
    %2 = vector.extract_strided_slice %1 {offsets = [0, 0], sizes = [7, 32], strides = [1, 1]} : vector<8x32xf32> to vector<7x32xf32>
    %3 = arith.truncf %2 : vector<7x32xf32> to vector<7x32xbf16>
    %c0_2 = arith.constant 0 : index
    %c0_3 = arith.constant 0 : index
    %4 = vector.load %arg2[%c0_2, %c0_3] : memref<32x128xbf16, #tpu.memory_space<vmem>>, vector<32x128xbf16>
    %cst = arith.constant dense<0.000000e+00> : vector<7x128xf32>
    %5 = tpu.matmul %3, %4, %cst {dimension_numbers = #tpu.dot_dimension_numbers<[1], [0], [0], [1], [0, 0, 1, 1], [], []>} : vector<7x32xbf16>, vector<32x128xbf16>, vector<7x128xf32> -> vector<7x128xf32>
    %c0_4 = arith.constant 0 : index
    %c0_5 = arith.constant 0 : index
    %6 = vector.load %arg3[%c0_4, %c0_5] : memref<1x128xf32, #tpu.memory_space<vmem>>, vector<1x128xf32>
    %7 = vector.broadcast %6 : vector<1x128xf32> to vector<7x128xf32>
    %8 = arith.addf %5, %7 : vector<7x128xf32>
    %c0_6 = arith.constant 0 : index
    %c0_7 = arith.constant 0 : index
    %c0_8 = arith.constant 0 : index
    %9 = vector.load %arg6[%c0_6, %c0_7, %c0_8] : memref<1x7x128xf32, #tpu.memory_space<vmem>>, vector<1x7x128xf32>
    %10 = vector.shape_cast %9 : vector<1x7x128xf32> to vector<7x128xf32>
    %11 = vector.shape_cast %8 : vector<7x128xf32> to vector<1x7x128xf32>
    tpu.vector_store %arg6[%c0_6, %c0_7, %c0_8], %11 {strides = array<i32>} : memref<1x7x128xf32, #tpu.memory_space<vmem>>, vector<1x7x128xf32>,
    %12 = vector.extract_strided_slice %1 {offsets = [7, 0], sizes = [1, 32], strides = [1, 1]} : vector<8x32xf32> to vector<1x32xf32>
    %13 = arith.truncf %12 : vector<1x32xf32> to vector<1x32xbf16>
    %c0_9 = arith.constant 0 : index
    %c0_10 = arith.constant 0 : index
    %14 = vector.load %arg4[%c0_9, %c0_10] : memref<32x128xbf16, #tpu.memory_space<vmem>>, vector<32x128xbf16>
    %cst_11 = arith.constant dense<0.000000e+00> : vector<1x128xf32>
    %15 = tpu.matmul %13, %14, %cst_11 {dimension_numbers = #tpu.dot_dimension_numbers<[1], [0], [0], [1], [0, 0, 1, 1], [], []>} : vector<1x32xbf16>, vector<32x128xbf16>, vector<1x128xf32> -> vector<1x128xf32>
    %c0_12 = arith.constant 0 : index
    %c0_13 = arith.constant 0 : index
    %16 = vector.load %arg5[%c0_12, %c0_13] : memref<1x128xf32, #tpu.memory_space<vmem>>, vector<1x128xf32>
    %17 = arith.addf %15, %16 : vector<1x128xf32>
    %c0_14 = arith.constant 0 : index
    %c0_15 = arith.constant 0 : index
    %c0_16 = arith.constant 0 : index
    %18 = vector.load %arg7[%c0_14, %c0_15, %c0_16] : memref<1x1x128xf32, #tpu.memory_space<vmem>>, vector<1x1x128xf32>
    %19 = vector.shape_cast %18 : vector<1x1x128xf32> to vector<1x128xf32>
    %20 = vector.shape_cast %17 : vector<1x128xf32> to vector<1x1x128xf32>
    tpu.vector_store %arg7[%c0_14, %c0_15, %c0_16], %20 {strides = array<i32>} : memref<1x1x128xf32, #tpu.memory_space<vmem>>, vector<1x1x128xf32>,
    return
  }
  func.func @transform_0(%arg0: i32) -> (i32, i32, i32) {
    %c0_i32 = arith.constant 0 : i32
    %c0_i32_0 = arith.constant 0 : i32
    %c0_i32_1 = arith.constant 0 : i32
    return %arg0, %c0_i32, %c0_i32_0 : i32, i32, i32
  }
  func.func @transform_1(%arg0: i32) -> (i32, i32) {
    %c0_i32 = arith.constant 0 : i32
    %c0_i32_0 = arith.constant 0 : i32
    %c0_i32_1 = arith.constant 0 : i32
    return %c0_i32, %c0_i32_0 : i32, i32
  }
  func.func @transform_2(%arg0: i32) -> (i32, i32) {
    %c0_i32 = arith.constant 0 : i32
    %c0_i32_0 = arith.constant 0 : i32
    %c0_i32_1 = arith.constant 0 : i32
    return %c0_i32, %c0_i32_0 : i32, i32
  }
  func.func @transform_3(%arg0: i32) -> (i32, i32) {
    %c0_i32 = arith.constant 0 : i32
    %c0_i32_0 = arith.constant 0 : i32
    %c0_i32_1 = arith.constant 0 : i32
    return %c0_i32, %c0_i32_0 : i32, i32
  }
  func.func @transform_4(%arg0: i32) -> (i32, i32) {
    %c0_i32 = arith.constant 0 : i32
    %c0_i32_0 = arith.constant 0 : i32
    %c0_i32_1 = arith.constant 0 : i32
    return %c0_i32, %c0_i32_0 : i32, i32
  }
  func.func @transform_5(%arg0: i32) -> (i32, i32, i32) {
    %c0_i32 = arith.constant 0 : i32
    %c0_i32_0 = arith.constant 0 : i32
    %c0_i32_1 = arith.constant 0 : i32
    return %arg0, %c0_i32, %c0_i32_0 : i32, i32, i32
  }
  func.func @transform_6(%arg0: i32) -> (i32, i32, i32) {
    %c0_i32 = arith.constant 0 : i32
    %c0_i32_0 = arith.constant 0 : i32
    %c0_i32_1 = arith.constant 0 : i32
    return %arg0, %c0_i32, %c0_i32_0 : i32, i32, i32
  }
}

module attributes {stable_mosaic.version = 11 : i64} {
  func.func @encoder_stack_kernel(%arg0: i32, %arg1: i32, %arg2: memref<2x8x32xf32, #tpu.memory_space<vmem>>, %arg3: memref<1x2x32x16xbf16, #tpu.memory_space<vmem>>, %arg4: memref<1x2x32x16xbf16, #tpu.memory_space<vmem>>, %arg5: memref<1x2x32x16xbf16, #tpu.memory_space<vmem>>, %arg6: memref<1x2x1x16xf32, #tpu.memory_space<vmem>>, %arg7: memref<1x2x1x16xf32, #tpu.memory_space<vmem>>, %arg8: memref<1x2x1x16xf32, #tpu.memory_space<vmem>>, %arg9: memref<1x2x16x32xbf16, #tpu.memory_space<vmem>>, %arg10: memref<1x1x32xf32, #tpu.memory_space<vmem>>, %arg11: memref<1x1x32xf32, #tpu.memory_space<vmem>>, %arg12: memref<1x1x32xf32, #tpu.memory_space<vmem>>, %arg13: memref<1x32x64xbf16, #tpu.memory_space<vmem>>, %arg14: memref<1x1x64xf32, #tpu.memory_space<vmem>>, %arg15: memref<1x64x32xbf16, #tpu.memory_space<vmem>>, %arg16: memref<1x1x32xf32, #tpu.memory_space<vmem>>, %arg17: memref<1x1x32xf32, #tpu.memory_space<vmem>>, %arg18: memref<1x1x32xf32, #tpu.memory_space<vmem>>, %arg19: memref<2x8x32xf32, #tpu.memory_space<vmem>>, %arg20: memref<2x8x32xf32, #tpu.memory_space<vmem>>) attributes {dimension_semantics = [#tpu.dimension_semantics<parallel>, #tpu.dimension_semantics<arbitrary>], iteration_bounds = array<i64: 1, 2>, scalar_prefetch = 0 : i64, scratch_operands = 1 : i64, tpu.core_type = #tpu.core_type<tc>, window_params = [{transform_indices = @transform_0, window_bounds = array<i64: 2, 8, 32>}, {transform_indices = @transform_1, window_bounds = array<i64: 1, 2, 32, 16>}, {transform_indices = @transform_2, window_bounds = array<i64: 1, 2, 32, 16>}, {transform_indices = @transform_3, window_bounds = array<i64: 1, 2, 32, 16>}, {transform_indices = @transform_4, window_bounds = array<i64: 1, 2, 1, 16>}, {transform_indices = @transform_5, window_bounds = array<i64: 1, 2, 1, 16>}, {transform_indices = @transform_6, window_bounds = array<i64: 1, 2, 1, 16>}, {transform_indices = @transform_7, window_bounds = array<i64: 1, 2, 16, 32>}, {transform_indices = @transform_8, window_bounds = array<i64: 1, 1, 32>}, {transform_indices = @transform_9, window_bounds = array<i64: 1, 1, 32>}, {transform_indices = @transform_10, window_bounds = array<i64: 1, 1, 32>}, {transform_indices = @transform_11, window_bounds = array<i64: 1, 32, 64>}, {transform_indices = @transform_12, window_bounds = array<i64: 1, 1, 64>}, {transform_indices = @transform_13, window_bounds = array<i64: 1, 64, 32>}, {transform_indices = @transform_14, window_bounds = array<i64: 1, 1, 32>}, {transform_indices = @transform_15, window_bounds = array<i64: 1, 1, 32>}, {transform_indices = @transform_16, window_bounds = array<i64: 1, 1, 32>}, {transform_indices = @transform_17, window_bounds = array<i64: 2, 8, 32>}]} {
    %c0_i32 = arith.constant 0 : i32
    %0 = arith.cmpi eq, %arg1, %c0_i32 : i32
    %1 = arith.extui %0 : i1 to i32
    %c0_i32_0 = arith.constant 0 : i32
    %2 = arith.cmpi ne, %1, %c0_i32_0 : i32
    scf.if %2 {
      %c0_124 = arith.constant 0 : index
      %c0_125 = arith.constant 0 : index
      %c0_126 = arith.constant 0 : index
      %198 = vector.load %arg2[%c0_124, %c0_125, %c0_126] : memref<2x8x32xf32, #tpu.memory_space<vmem>>, vector<2x8x32xf32>
      %c0_127 = arith.constant 0 : index
      %c0_128 = arith.constant 0 : index
      %c0_129 = arith.constant 0 : index
      %199 = vector.load %arg20[%c0_127, %c0_128, %c0_129] : memref<2x8x32xf32, #tpu.memory_space<vmem>>, vector<2x8x32xf32>
      tpu.vector_store %arg20[%c0_127, %c0_128, %c0_129], %198 {strides = array<i32>} : memref<2x8x32xf32, #tpu.memory_space<vmem>>, vector<2x8x32xf32>,
    } else {
    }
    %c0 = arith.constant 0 : index
    %c0_1 = arith.constant 0 : index
    %c0_2 = arith.constant 0 : index
    %3 = vector.load %arg20[%c0, %c0_1, %c0_2] : memref<2x8x32xf32, #tpu.memory_space<vmem>>, vector<2x8x32xf32>
    %4 = vector.shape_cast %3 : vector<2x8x32xf32> to vector<16x32xf32>
    %5 = arith.truncf %4 : vector<16x32xf32> to vector<16x32xbf16>
    %6 = tpu.iota {dimensions = array<i32: 0>} : vector<8x8xi32>
    %7 = tpu.iota {dimensions = array<i32: 1>} : vector<8x8xi32>
    %8 = arith.cmpi sle, %7, %6 : vector<8x8xi32>
    %9 = vector.shape_cast %8 : vector<8x8xi1> to vector<1x8x8xi1>
    %cst = arith.constant 0.000000e+00 : f32
    %10 = vector.broadcast %cst : f32 to vector<16x32xf32>
    %c0_3 = arith.constant 0 : index
    %c0_4 = arith.constant 0 : index
    %c0_5 = arith.constant 0 : index
    %c0_6 = arith.constant 0 : index
    %11 = vector.load %arg3[%c0_3, %c0_4, %c0_5, %c0_6] : memref<1x2x32x16xbf16, #tpu.memory_space<vmem>>, vector<1x1x32x16xbf16>
    %12 = vector.shape_cast %11 : vector<1x1x32x16xbf16> to vector<32x16xbf16>
    %cst_7 = arith.constant dense<0.000000e+00> : vector<16x16xf32>
    %13 = tpu.matmul %5, %12, %cst_7 {dimension_numbers = #tpu.dot_dimension_numbers<[1], [0], [0], [1], [0, 0, 1, 1], [], []>} : vector<16x32xbf16>, vector<32x16xbf16>, vector<16x16xf32> -> vector<16x16xf32>
    %c0_8 = arith.constant 0 : index
    %c0_9 = arith.constant 0 : index
    %c0_10 = arith.constant 0 : index
    %c0_11 = arith.constant 0 : index
    %14 = vector.load %arg6[%c0_8, %c0_9, %c0_10, %c0_11] : memref<1x2x1x16xf32, #tpu.memory_space<vmem>>, vector<1x1x1x16xf32>
    %15 = vector.shape_cast %14 : vector<1x1x1x16xf32> to vector<1x16xf32>
    %16 = vector.broadcast %15 : vector<1x16xf32> to vector<16x16xf32>
    %17 = arith.addf %13, %16 : vector<16x16xf32>
    %c0_12 = arith.constant 0 : index
    %c0_13 = arith.constant 0 : index
    %c0_14 = arith.constant 0 : index
    %c0_15 = arith.constant 0 : index
    %18 = vector.load %arg4[%c0_12, %c0_13, %c0_14, %c0_15] : memref<1x2x32x16xbf16, #tpu.memory_space<vmem>>, vector<1x1x32x16xbf16>
    %19 = vector.shape_cast %18 : vector<1x1x32x16xbf16> to vector<32x16xbf16>
    %cst_16 = arith.constant dense<0.000000e+00> : vector<16x16xf32>
    %20 = tpu.matmul %5, %19, %cst_16 {dimension_numbers = #tpu.dot_dimension_numbers<[1], [0], [0], [1], [0, 0, 1, 1], [], []>} : vector<16x32xbf16>, vector<32x16xbf16>, vector<16x16xf32> -> vector<16x16xf32>
    %c0_17 = arith.constant 0 : index
    %c0_18 = arith.constant 0 : index
    %c0_19 = arith.constant 0 : index
    %c0_20 = arith.constant 0 : index
    %21 = vector.load %arg7[%c0_17, %c0_18, %c0_19, %c0_20] : memref<1x2x1x16xf32, #tpu.memory_space<vmem>>, vector<1x1x1x16xf32>
    %22 = vector.shape_cast %21 : vector<1x1x1x16xf32> to vector<1x16xf32>
    %23 = vector.broadcast %22 : vector<1x16xf32> to vector<16x16xf32>
    %24 = arith.addf %20, %23 : vector<16x16xf32>
    %c0_21 = arith.constant 0 : index
    %c0_22 = arith.constant 0 : index
    %c0_23 = arith.constant 0 : index
    %c0_24 = arith.constant 0 : index
    %25 = vector.load %arg5[%c0_21, %c0_22, %c0_23, %c0_24] : memref<1x2x32x16xbf16, #tpu.memory_space<vmem>>, vector<1x1x32x16xbf16>
    %26 = vector.shape_cast %25 : vector<1x1x32x16xbf16> to vector<32x16xbf16>
    %cst_25 = arith.constant dense<0.000000e+00> : vector<16x16xf32>
    %27 = tpu.matmul %5, %26, %cst_25 {dimension_numbers = #tpu.dot_dimension_numbers<[1], [0], [0], [1], [0, 0, 1, 1], [], []>} : vector<16x32xbf16>, vector<32x16xbf16>, vector<16x16xf32> -> vector<16x16xf32>
    %c0_26 = arith.constant 0 : index
    %c0_27 = arith.constant 0 : index
    %c0_28 = arith.constant 0 : index
    %c0_29 = arith.constant 0 : index
    %28 = vector.load %arg8[%c0_26, %c0_27, %c0_28, %c0_29] : memref<1x2x1x16xf32, #tpu.memory_space<vmem>>, vector<1x1x1x16xf32>
    %29 = vector.shape_cast %28 : vector<1x1x1x16xf32> to vector<1x16xf32>
    %30 = vector.broadcast %29 : vector<1x16xf32> to vector<16x16xf32>
    %31 = arith.addf %27, %30 : vector<16x16xf32>
    %32 = vector.shape_cast %17 : vector<16x16xf32> to vector<2x8x16xf32>
    %33 = arith.truncf %32 : vector<2x8x16xf32> to vector<2x8x16xbf16>
    %34 = vector.shape_cast %24 : vector<16x16xf32> to vector<2x8x16xf32>
    %35 = arith.truncf %34 : vector<2x8x16xf32> to vector<2x8x16xbf16>
    %36 = vector.shape_cast %31 : vector<16x16xf32> to vector<2x8x16xf32>
    %37 = arith.truncf %36 : vector<2x8x16xf32> to vector<2x8x16xbf16>
    "tpu.trace_start"() <{level = 10 : i32, message = "bqd,bkd->bqk"}> : () -> ()
    %cst_30 = arith.constant dense<0.000000e+00> : vector<2x8x8xf32>
    %38 = tpu.matmul %33, %35, %cst_30 {dimension_numbers = #tpu.dot_dimension_numbers<[2], [2], [1], [1], [0, 0, 0, 1, 1, 1], [0], [0]>} : vector<2x8x16xbf16>, vector<2x8x16xbf16>, vector<2x8x8xf32> -> vector<2x8x8xf32>
    "tpu.trace_stop"() : () -> ()
    %cst_31 = arith.constant 2.500000e-01 : f32
    %39 = vector.broadcast %cst_31 : f32 to vector<2x8x8xf32>
    %40 = arith.mulf %38, %39 : vector<2x8x8xf32>
    %cst_32 = arith.constant -1.000000e+30 : f32
    %41 = vector.shape_cast %9 : vector<1x8x8xi1> to vector<1x8x8xi1>
    %42 = vector.broadcast %41 : vector<1x8x8xi1> to vector<2x8x8xi1>
    %43 = vector.broadcast %cst_32 : f32 to vector<2x8x8xf32>
    %44 = arith.select %42, %40, %43 : vector<2x8x8xi1>, vector<2x8x8xf32>
    %cst_33 = arith.constant dense<0xFF800000> : vector<2x8xf32>
    %45 = vector.multi_reduction <maximumf>, %44, %cst_33 [2] : vector<2x8x8xf32> to vector<2x8xf32>
    %46 = vector.shape_cast %45 : vector<2x8xf32> to vector<2x8x1xf32>
    %47 = vector.broadcast %46 : vector<2x8x1xf32> to vector<2x8x8xf32>
    %48 = arith.subf %44, %47 : vector<2x8x8xf32>
    %49 = math.exp %48 : vector<2x8x8xf32>
    %cst_34 = arith.constant dense<0.000000e+00> : vector<2x8xf32>
    %50 = vector.multi_reduction <add>, %49, %cst_34 [2] : vector<2x8x8xf32> to vector<2x8xf32>
    %51 = vector.shape_cast %50 : vector<2x8xf32> to vector<2x8x1xf32>
    %52 = tpu.reciprocal %51 {approx = true} : vector<2x8x1xf32> -> vector<2x8x1xf32>
    %53 = vector.broadcast %52 : vector<2x8x1xf32> to vector<2x8x8xf32>
    %54 = arith.mulf %49, %53 : vector<2x8x8xf32>
    %55 = arith.truncf %54 : vector<2x8x8xf32> to vector<2x8x8xbf16>
    "tpu.trace_start"() <{level = 10 : i32, message = "bqk,bkd->bqd"}> : () -> ()
    %cst_35 = arith.constant dense<0.000000e+00> : vector<2x8x16xf32>
    %56 = tpu.matmul %55, %37, %cst_35 {dimension_numbers = #tpu.dot_dimension_numbers<[2], [1], [1], [2], [0, 0, 0, 1, 1, 2], [0], [0]>} : vector<2x8x8xbf16>, vector<2x8x16xbf16>, vector<2x8x16xf32> -> vector<2x8x16xf32>
    "tpu.trace_stop"() : () -> ()
    %57 = vector.shape_cast %56 : vector<2x8x16xf32> to vector<16x16xf32>
    %58 = arith.truncf %57 : vector<16x16xf32> to vector<16x16xbf16>
    %c0_36 = arith.constant 0 : index
    %c0_37 = arith.constant 0 : index
    %c0_38 = arith.constant 0 : index
    %c0_39 = arith.constant 0 : index
    %59 = vector.load %arg9[%c0_36, %c0_37, %c0_38, %c0_39] : memref<1x2x16x32xbf16, #tpu.memory_space<vmem>>, vector<1x1x16x32xbf16>
    %60 = vector.shape_cast %59 : vector<1x1x16x32xbf16> to vector<16x32xbf16>
    %cst_40 = arith.constant dense<0.000000e+00> : vector<16x32xf32>
    %61 = tpu.matmul %58, %60, %cst_40 {dimension_numbers = #tpu.dot_dimension_numbers<[1], [0], [0], [1], [0, 0, 1, 1], [], []>} : vector<16x16xbf16>, vector<16x32xbf16>, vector<16x32xf32> -> vector<16x32xf32>
    %62 = arith.addf %10, %61 : vector<16x32xf32>
    %c0_41 = arith.constant 0 : index
    %c1 = arith.constant 1 : index
    %c0_42 = arith.constant 0 : index
    %c0_43 = arith.constant 0 : index
    %63 = vector.load %arg3[%c0_41, %c1, %c0_42, %c0_43] : memref<1x2x32x16xbf16, #tpu.memory_space<vmem>>, vector<1x1x32x16xbf16>
    %64 = vector.shape_cast %63 : vector<1x1x32x16xbf16> to vector<32x16xbf16>
    %cst_44 = arith.constant dense<0.000000e+00> : vector<16x16xf32>
    %65 = tpu.matmul %5, %64, %cst_44 {dimension_numbers = #tpu.dot_dimension_numbers<[1], [0], [0], [1], [0, 0, 1, 1], [], []>} : vector<16x32xbf16>, vector<32x16xbf16>, vector<16x16xf32> -> vector<16x16xf32>
    %c0_45 = arith.constant 0 : index
    %c1_46 = arith.constant 1 : index
    %c0_47 = arith.constant 0 : index
    %c0_48 = arith.constant 0 : index
    %66 = vector.load %arg6[%c0_45, %c1_46, %c0_47, %c0_48] : memref<1x2x1x16xf32, #tpu.memory_space<vmem>>, vector<1x1x1x16xf32>
    %67 = vector.shape_cast %66 : vector<1x1x1x16xf32> to vector<1x16xf32>
    %68 = vector.broadcast %67 : vector<1x16xf32> to vector<16x16xf32>
    %69 = arith.addf %65, %68 : vector<16x16xf32>
    %c0_49 = arith.constant 0 : index
    %c1_50 = arith.constant 1 : index
    %c0_51 = arith.constant 0 : index
    %c0_52 = arith.constant 0 : index
    %70 = vector.load %arg4[%c0_49, %c1_50, %c0_51, %c0_52] : memref<1x2x32x16xbf16, #tpu.memory_space<vmem>>, vector<1x1x32x16xbf16>
    %71 = vector.shape_cast %70 : vector<1x1x32x16xbf16> to vector<32x16xbf16>
    %cst_53 = arith.constant dense<0.000000e+00> : vector<16x16xf32>
    %72 = tpu.matmul %5, %71, %cst_53 {dimension_numbers = #tpu.dot_dimension_numbers<[1], [0], [0], [1], [0, 0, 1, 1], [], []>} : vector<16x32xbf16>, vector<32x16xbf16>, vector<16x16xf32> -> vector<16x16xf32>
    %c0_54 = arith.constant 0 : index
    %c1_55 = arith.constant 1 : index
    %c0_56 = arith.constant 0 : index
    %c0_57 = arith.constant 0 : index
    %73 = vector.load %arg7[%c0_54, %c1_55, %c0_56, %c0_57] : memref<1x2x1x16xf32, #tpu.memory_space<vmem>>, vector<1x1x1x16xf32>
    %74 = vector.shape_cast %73 : vector<1x1x1x16xf32> to vector<1x16xf32>
    %75 = vector.broadcast %74 : vector<1x16xf32> to vector<16x16xf32>
    %76 = arith.addf %72, %75 : vector<16x16xf32>
    %c0_58 = arith.constant 0 : index
    %c1_59 = arith.constant 1 : index
    %c0_60 = arith.constant 0 : index
    %c0_61 = arith.constant 0 : index
    %77 = vector.load %arg5[%c0_58, %c1_59, %c0_60, %c0_61] : memref<1x2x32x16xbf16, #tpu.memory_space<vmem>>, vector<1x1x32x16xbf16>
    %78 = vector.shape_cast %77 : vector<1x1x32x16xbf16> to vector<32x16xbf16>
    %cst_62 = arith.constant dense<0.000000e+00> : vector<16x16xf32>
    %79 = tpu.matmul %5, %78, %cst_62 {dimension_numbers = #tpu.dot_dimension_numbers<[1], [0], [0], [1], [0, 0, 1, 1], [], []>} : vector<16x32xbf16>, vector<32x16xbf16>, vector<16x16xf32> -> vector<16x16xf32>
    %c0_63 = arith.constant 0 : index
    %c1_64 = arith.constant 1 : index
    %c0_65 = arith.constant 0 : index
    %c0_66 = arith.constant 0 : index
    %80 = vector.load %arg8[%c0_63, %c1_64, %c0_65, %c0_66] : memref<1x2x1x16xf32, #tpu.memory_space<vmem>>, vector<1x1x1x16xf32>
    %81 = vector.shape_cast %80 : vector<1x1x1x16xf32> to vector<1x16xf32>
    %82 = vector.broadcast %81 : vector<1x16xf32> to vector<16x16xf32>
    %83 = arith.addf %79, %82 : vector<16x16xf32>
    %84 = vector.shape_cast %69 : vector<16x16xf32> to vector<2x8x16xf32>
    %85 = arith.truncf %84 : vector<2x8x16xf32> to vector<2x8x16xbf16>
    %86 = vector.shape_cast %76 : vector<16x16xf32> to vector<2x8x16xf32>
    %87 = arith.truncf %86 : vector<2x8x16xf32> to vector<2x8x16xbf16>
    %88 = vector.shape_cast %83 : vector<16x16xf32> to vector<2x8x16xf32>
    %89 = arith.truncf %88 : vector<2x8x16xf32> to vector<2x8x16xbf16>
    "tpu.trace_start"() <{level = 10 : i32, message = "bqd,bkd->bqk"}> : () -> ()
    %cst_67 = arith.constant dense<0.000000e+00> : vector<2x8x8xf32>
    %90 = tpu.matmul %85, %87, %cst_67 {dimension_numbers = #tpu.dot_dimension_numbers<[2], [2], [1], [1], [0, 0, 0, 1, 1, 1], [0], [0]>} : vector<2x8x16xbf16>, vector<2x8x16xbf16>, vector<2x8x8xf32> -> vector<2x8x8xf32>
    "tpu.trace_stop"() : () -> ()
    %cst_68 = arith.constant 2.500000e-01 : f32
    %91 = vector.broadcast %cst_68 : f32 to vector<2x8x8xf32>
    %92 = arith.mulf %90, %91 : vector<2x8x8xf32>
    %cst_69 = arith.constant -1.000000e+30 : f32
    %93 = vector.shape_cast %9 : vector<1x8x8xi1> to vector<1x8x8xi1>
    %94 = vector.broadcast %93 : vector<1x8x8xi1> to vector<2x8x8xi1>
    %95 = vector.broadcast %cst_69 : f32 to vector<2x8x8xf32>
    %96 = arith.select %94, %92, %95 : vector<2x8x8xi1>, vector<2x8x8xf32>
    %cst_70 = arith.constant dense<0xFF800000> : vector<2x8xf32>
    %97 = vector.multi_reduction <maximumf>, %96, %cst_70 [2] : vector<2x8x8xf32> to vector<2x8xf32>
    %98 = vector.shape_cast %97 : vector<2x8xf32> to vector<2x8x1xf32>
    %99 = vector.broadcast %98 : vector<2x8x1xf32> to vector<2x8x8xf32>
    %100 = arith.subf %96, %99 : vector<2x8x8xf32>
    %101 = math.exp %100 : vector<2x8x8xf32>
    %cst_71 = arith.constant dense<0.000000e+00> : vector<2x8xf32>
    %102 = vector.multi_reduction <add>, %101, %cst_71 [2] : vector<2x8x8xf32> to vector<2x8xf32>
    %103 = vector.shape_cast %102 : vector<2x8xf32> to vector<2x8x1xf32>
    %104 = tpu.reciprocal %103 {approx = true} : vector<2x8x1xf32> -> vector<2x8x1xf32>
    %105 = vector.broadcast %104 : vector<2x8x1xf32> to vector<2x8x8xf32>
    %106 = arith.mulf %101, %105 : vector<2x8x8xf32>
    %107 = arith.truncf %106 : vector<2x8x8xf32> to vector<2x8x8xbf16>
    "tpu.trace_start"() <{level = 10 : i32, message = "bqk,bkd->bqd"}> : () -> ()
    %cst_72 = arith.constant dense<0.000000e+00> : vector<2x8x16xf32>
    %108 = tpu.matmul %107, %89, %cst_72 {dimension_numbers = #tpu.dot_dimension_numbers<[2], [1], [1], [2], [0, 0, 0, 1, 1, 2], [0], [0]>} : vector<2x8x8xbf16>, vector<2x8x16xbf16>, vector<2x8x16xf32> -> vector<2x8x16xf32>
    "tpu.trace_stop"() : () -> ()
    %109 = vector.shape_cast %108 : vector<2x8x16xf32> to vector<16x16xf32>
    %110 = arith.truncf %109 : vector<16x16xf32> to vector<16x16xbf16>
    %c0_73 = arith.constant 0 : index
    %c1_74 = arith.constant 1 : index
    %c0_75 = arith.constant 0 : index
    %c0_76 = arith.constant 0 : index
    %111 = vector.load %arg9[%c0_73, %c1_74, %c0_75, %c0_76] : memref<1x2x16x32xbf16, #tpu.memory_space<vmem>>, vector<1x1x16x32xbf16>
    %112 = vector.shape_cast %111 : vector<1x1x16x32xbf16> to vector<16x32xbf16>
    %cst_77 = arith.constant dense<0.000000e+00> : vector<16x32xf32>
    %113 = tpu.matmul %110, %112, %cst_77 {dimension_numbers = #tpu.dot_dimension_numbers<[1], [0], [0], [1], [0, 0, 1, 1], [], []>} : vector<16x16xbf16>, vector<16x32xbf16>, vector<16x32xf32> -> vector<16x32xf32>
    %114 = arith.addf %62, %113 : vector<16x32xf32>
    %c0_78 = arith.constant 0 : index
    %c0_79 = arith.constant 0 : index
    %c0_80 = arith.constant 0 : index
    %115 = vector.load %arg10[%c0_78, %c0_79, %c0_80] : memref<1x1x32xf32, #tpu.memory_space<vmem>>, vector<1x1x32xf32>
    %116 = vector.shape_cast %115 : vector<1x1x32xf32> to vector<1x32xf32>
    %117 = vector.broadcast %116 : vector<1x32xf32> to vector<16x32xf32>
    %118 = arith.addf %114, %117 : vector<16x32xf32>
    %119 = arith.addf %4, %118 : vector<16x32xf32>
    %c0_81 = arith.constant 0 : index
    %c0_82 = arith.constant 0 : index
    %c0_83 = arith.constant 0 : index
    %120 = vector.load %arg11[%c0_81, %c0_82, %c0_83] : memref<1x1x32xf32, #tpu.memory_space<vmem>>, vector<1x1x32xf32>
    %121 = vector.shape_cast %120 : vector<1x1x32xf32> to vector<1x32xf32>
    %c0_84 = arith.constant 0 : index
    %c0_85 = arith.constant 0 : index
    %c0_86 = arith.constant 0 : index
    %122 = vector.load %arg12[%c0_84, %c0_85, %c0_86] : memref<1x1x32xf32, #tpu.memory_space<vmem>>, vector<1x1x32xf32>
    %123 = vector.shape_cast %122 : vector<1x1x32xf32> to vector<1x32xf32>
    %cst_87 = arith.constant dense<0.000000e+00> : vector<16xf32>
    %124 = vector.multi_reduction <add>, %119, %cst_87 [1] : vector<16x32xf32> to vector<16xf32>
    %125 = vector.shape_cast %124 : vector<16xf32> to vector<16x1xf32>
    %cst_88 = arith.constant 3.200000e+01 : f32
    %126 = vector.broadcast %cst_88 : f32 to vector<16x1xf32>
    %127 = arith.divf %125, %126 : vector<16x1xf32>
    %128 = vector.broadcast %127 : vector<16x1xf32> to vector<16x32xf32>
    %129 = arith.subf %119, %128 : vector<16x32xf32>
    %130 = arith.mulf %129, %129 : vector<16x32xf32>
    %cst_89 = arith.constant dense<0.000000e+00> : vector<16xf32>
    %131 = vector.multi_reduction <add>, %130, %cst_89 [1] : vector<16x32xf32> to vector<16xf32>
    %132 = vector.shape_cast %131 : vector<16xf32> to vector<16x1xf32>
    %cst_90 = arith.constant 3.200000e+01 : f32
    %133 = vector.broadcast %cst_90 : f32 to vector<16x1xf32>
    %134 = arith.divf %132, %133 : vector<16x1xf32>
    %cst_91 = arith.constant 9.99999974E-6 : f32
    %135 = vector.broadcast %cst_91 : f32 to vector<16x1xf32>
    %136 = arith.addf %134, %135 : vector<16x1xf32>
    %137 = math.rsqrt %136 : vector<16x1xf32>
    %138 = vector.broadcast %137 : vector<16x1xf32> to vector<16x32xf32>
    %139 = arith.mulf %129, %138 : vector<16x32xf32>
    %140 = vector.broadcast %121 : vector<1x32xf32> to vector<16x32xf32>
    %141 = arith.mulf %139, %140 : vector<16x32xf32>
    %142 = vector.broadcast %123 : vector<1x32xf32> to vector<16x32xf32>
    %143 = arith.addf %141, %142 : vector<16x32xf32>
    %144 = arith.truncf %143 : vector<16x32xf32> to vector<16x32xbf16>
    %c0_92 = arith.constant 0 : index
    %c0_93 = arith.constant 0 : index
    %c0_94 = arith.constant 0 : index
    %145 = vector.load %arg13[%c0_92, %c0_93, %c0_94] : memref<1x32x64xbf16, #tpu.memory_space<vmem>>, vector<1x32x64xbf16>
    %146 = vector.shape_cast %145 : vector<1x32x64xbf16> to vector<32x64xbf16>
    %cst_95 = arith.constant dense<0.000000e+00> : vector<16x64xf32>
    %147 = tpu.matmul %144, %146, %cst_95 {dimension_numbers = #tpu.dot_dimension_numbers<[1], [0], [0], [1], [0, 0, 1, 1], [], []>} : vector<16x32xbf16>, vector<32x64xbf16>, vector<16x64xf32> -> vector<16x64xf32>
    %c0_96 = arith.constant 0 : index
    %c0_97 = arith.constant 0 : index
    %c0_98 = arith.constant 0 : index
    %148 = vector.load %arg14[%c0_96, %c0_97, %c0_98] : memref<1x1x64xf32, #tpu.memory_space<vmem>>, vector<1x1x64xf32>
    %149 = vector.shape_cast %148 : vector<1x1x64xf32> to vector<1x64xf32>
    %150 = vector.broadcast %149 : vector<1x64xf32> to vector<16x64xf32>
    %151 = arith.addf %147, %150 : vector<16x64xf32>
    %cst_99 = arith.constant 5.000000e-01 : f32
    %152 = vector.broadcast %cst_99 : f32 to vector<16x64xf32>
    %153 = arith.mulf %152, %151 : vector<16x64xf32>
    %cst_100 = arith.constant 0.707106769 : f32
    %154 = vector.broadcast %cst_100 : f32 to vector<16x64xf32>
    %155 = arith.mulf %151, %154 : vector<16x64xf32>
    %156 = math.erf %155 : vector<16x64xf32>
    %cst_101 = arith.constant 1.000000e+00 : f32
    %157 = vector.broadcast %cst_101 : f32 to vector<16x64xf32>
    %158 = arith.addf %157, %156 : vector<16x64xf32>
    %159 = arith.mulf %153, %158 : vector<16x64xf32>
    %160 = arith.truncf %159 : vector<16x64xf32> to vector<16x64xbf16>
    %c0_102 = arith.constant 0 : index
    %c0_103 = arith.constant 0 : index
    %c0_104 = arith.constant 0 : index
    %161 = vector.load %arg15[%c0_102, %c0_103, %c0_104] : memref<1x64x32xbf16, #tpu.memory_space<vmem>>, vector<1x64x32xbf16>
    %162 = vector.shape_cast %161 : vector<1x64x32xbf16> to vector<64x32xbf16>
    %cst_105 = arith.constant dense<0.000000e+00> : vector<16x32xf32>
    %163 = tpu.matmul %160, %162, %cst_105 {dimension_numbers = #tpu.dot_dimension_numbers<[1], [0], [0], [1], [0, 0, 1, 1], [], []>} : vector<16x64xbf16>, vector<64x32xbf16>, vector<16x32xf32> -> vector<16x32xf32>
    %c0_106 = arith.constant 0 : index
    %c0_107 = arith.constant 0 : index
    %c0_108 = arith.constant 0 : index
    %164 = vector.load %arg16[%c0_106, %c0_107, %c0_108] : memref<1x1x32xf32, #tpu.memory_space<vmem>>, vector<1x1x32xf32>
    %165 = vector.shape_cast %164 : vector<1x1x32xf32> to vector<1x32xf32>
    %166 = vector.broadcast %165 : vector<1x32xf32> to vector<16x32xf32>
    %167 = arith.addf %163, %166 : vector<16x32xf32>
    %168 = arith.addf %143, %167 : vector<16x32xf32>
    %c0_109 = arith.constant 0 : index
    %c0_110 = arith.constant 0 : index
    %c0_111 = arith.constant 0 : index
    %169 = vector.load %arg17[%c0_109, %c0_110, %c0_111] : memref<1x1x32xf32, #tpu.memory_space<vmem>>, vector<1x1x32xf32>
    %170 = vector.shape_cast %169 : vector<1x1x32xf32> to vector<1x32xf32>
    %c0_112 = arith.constant 0 : index
    %c0_113 = arith.constant 0 : index
    %c0_114 = arith.constant 0 : index
    %171 = vector.load %arg18[%c0_112, %c0_113, %c0_114] : memref<1x1x32xf32, #tpu.memory_space<vmem>>, vector<1x1x32xf32>
    %172 = vector.shape_cast %171 : vector<1x1x32xf32> to vector<1x32xf32>
    %cst_115 = arith.constant dense<0.000000e+00> : vector<16xf32>
    %173 = vector.multi_reduction <add>, %168, %cst_115 [1] : vector<16x32xf32> to vector<16xf32>
    %174 = vector.shape_cast %173 : vector<16xf32> to vector<16x1xf32>
    %cst_116 = arith.constant 3.200000e+01 : f32
    %175 = vector.broadcast %cst_116 : f32 to vector<16x1xf32>
    %176 = arith.divf %174, %175 : vector<16x1xf32>
    %177 = vector.broadcast %176 : vector<16x1xf32> to vector<16x32xf32>
    %178 = arith.subf %168, %177 : vector<16x32xf32>
    %179 = arith.mulf %178, %178 : vector<16x32xf32>
    %cst_117 = arith.constant dense<0.000000e+00> : vector<16xf32>
    %180 = vector.multi_reduction <add>, %179, %cst_117 [1] : vector<16x32xf32> to vector<16xf32>
    %181 = vector.shape_cast %180 : vector<16xf32> to vector<16x1xf32>
    %cst_118 = arith.constant 3.200000e+01 : f32
    %182 = vector.broadcast %cst_118 : f32 to vector<16x1xf32>
    %183 = arith.divf %181, %182 : vector<16x1xf32>
    %cst_119 = arith.constant 9.99999974E-6 : f32
    %184 = vector.broadcast %cst_119 : f32 to vector<16x1xf32>
    %185 = arith.addf %183, %184 : vector<16x1xf32>
    %186 = math.rsqrt %185 : vector<16x1xf32>
    %187 = vector.broadcast %186 : vector<16x1xf32> to vector<16x32xf32>
    %188 = arith.mulf %178, %187 : vector<16x32xf32>
    %189 = vector.broadcast %170 : vector<1x32xf32> to vector<16x32xf32>
    %190 = arith.mulf %188, %189 : vector<16x32xf32>
    %191 = vector.broadcast %172 : vector<1x32xf32> to vector<16x32xf32>
    %192 = arith.addf %190, %191 : vector<16x32xf32>
    %193 = vector.shape_cast %192 : vector<16x32xf32> to vector<2x8x32xf32>
    %c0_120 = arith.constant 0 : index
    %c0_121 = arith.constant 0 : index
    %c0_122 = arith.constant 0 : index
    %194 = vector.load %arg20[%c0_120, %c0_121, %c0_122] : memref<2x8x32xf32, #tpu.memory_space<vmem>>, vector<2x8x32xf32>
    tpu.vector_store %arg20[%c0_120, %c0_121, %c0_122], %193 {strides = array<i32>} : memref<2x8x32xf32, #tpu.memory_space<vmem>>, vector<2x8x32xf32>,
    %c1_i32 = arith.constant 1 : i32
    %195 = arith.cmpi eq, %arg1, %c1_i32 : i32
    %196 = arith.extui %195 : i1 to i32
    %c0_i32_123 = arith.constant 0 : i32
    %197 = arith.cmpi ne, %196, %c0_i32_123 : i32
    scf.if %197 {
      %c0_124 = arith.constant 0 : index
      %c0_125 = arith.constant 0 : index
      %c0_126 = arith.constant 0 : index
      %198 = vector.load %arg19[%c0_124, %c0_125, %c0_126] : memref<2x8x32xf32, #tpu.memory_space<vmem>>, vector<2x8x32xf32>
      tpu.vector_store %arg19[%c0_124, %c0_125, %c0_126], %193 {strides = array<i32>} : memref<2x8x32xf32, #tpu.memory_space<vmem>>, vector<2x8x32xf32>,
    } else {
    }
    return
  }
  func.func @transform_0(%arg0: i32, %arg1: i32) -> (i32, i32, i32) {
    %c0_i32 = arith.constant 0 : i32
    %c0_i32_0 = arith.constant 0 : i32
    %c0_i32_1 = arith.constant 0 : i32
    return %arg0, %c0_i32, %c0_i32_0 : i32, i32, i32
  }
  func.func @transform_1(%arg0: i32, %arg1: i32) -> (i32, i32, i32, i32) {
    %c0_i32 = arith.constant 0 : i32
    %c0_i32_0 = arith.constant 0 : i32
    %c0_i32_1 = arith.constant 0 : i32
    %c0_i32_2 = arith.constant 0 : i32
    return %arg1, %c0_i32, %c0_i32_0, %c0_i32_1 : i32, i32, i32, i32
  }
  func.func @transform_2(%arg0: i32, %arg1: i32) -> (i32, i32, i32, i32) {
    %c0_i32 = arith.constant 0 : i32
    %c0_i32_0 = arith.constant 0 : i32
    %c0_i32_1 = arith.constant 0 : i32
    %c0_i32_2 = arith.constant 0 : i32
    return %arg1, %c0_i32, %c0_i32_0, %c0_i32_1 : i32, i32, i32, i32
  }
  func.func @transform_3(%arg0: i32, %arg1: i32) -> (i32, i32, i32, i32) {
    %c0_i32 = arith.constant 0 : i32
    %c0_i32_0 = arith.constant 0 : i32
    %c0_i32_1 = arith.constant 0 : i32
    %c0_i32_2 = arith.constant 0 : i32
    return %arg1, %c0_i32, %c0_i32_0, %c0_i32_1 : i32, i32, i32, i32
  }
  func.func @transform_4(%arg0: i32, %arg1: i32) -> (i32, i32, i32, i32) {
    %c0_i32 = arith.constant 0 : i32
    %c0_i32_0 = arith.constant 0 : i32
    %c0_i32_1 = arith.constant 0 : i32
    %c0_i32_2 = arith.constant 0 : i32
    return %arg1, %c0_i32, %c0_i32_0, %c0_i32_1 : i32, i32, i32, i32
  }
  func.func @transform_5(%arg0: i32, %arg1: i32) -> (i32, i32, i32, i32) {
    %c0_i32 = arith.constant 0 : i32
    %c0_i32_0 = arith.constant 0 : i32
    %c0_i32_1 = arith.constant 0 : i32
    %c0_i32_2 = arith.constant 0 : i32
    return %arg1, %c0_i32, %c0_i32_0, %c0_i32_1 : i32, i32, i32, i32
  }
  func.func @transform_6(%arg0: i32, %arg1: i32) -> (i32, i32, i32, i32) {
    %c0_i32 = arith.constant 0 : i32
    %c0_i32_0 = arith.constant 0 : i32
    %c0_i32_1 = arith.constant 0 : i32
    %c0_i32_2 = arith.constant 0 : i32
    return %arg1, %c0_i32, %c0_i32_0, %c0_i32_1 : i32, i32, i32, i32
  }
  func.func @transform_7(%arg0: i32, %arg1: i32) -> (i32, i32, i32, i32) {
    %c0_i32 = arith.constant 0 : i32
    %c0_i32_0 = arith.constant 0 : i32
    %c0_i32_1 = arith.constant 0 : i32
    %c0_i32_2 = arith.constant 0 : i32
    return %arg1, %c0_i32, %c0_i32_0, %c0_i32_1 : i32, i32, i32, i32
  }
  func.func @transform_8(%arg0: i32, %arg1: i32) -> (i32, i32, i32) {
    %c0_i32 = arith.constant 0 : i32
    %c0_i32_0 = arith.constant 0 : i32
    %c0_i32_1 = arith.constant 0 : i32
    return %arg1, %c0_i32, %c0_i32_0 : i32, i32, i32
  }
  func.func @transform_9(%arg0: i32, %arg1: i32) -> (i32, i32, i32) {
    %c0_i32 = arith.constant 0 : i32
    %c0_i32_0 = arith.constant 0 : i32
    %c0_i32_1 = arith.constant 0 : i32
    return %arg1, %c0_i32, %c0_i32_0 : i32, i32, i32
  }
  func.func @transform_10(%arg0: i32, %arg1: i32) -> (i32, i32, i32) {
    %c0_i32 = arith.constant 0 : i32
    %c0_i32_0 = arith.constant 0 : i32
    %c0_i32_1 = arith.constant 0 : i32
    return %arg1, %c0_i32, %c0_i32_0 : i32, i32, i32
  }
  func.func @transform_11(%arg0: i32, %arg1: i32) -> (i32, i32, i32) {
    %c0_i32 = arith.constant 0 : i32
    %c0_i32_0 = arith.constant 0 : i32
    %c0_i32_1 = arith.constant 0 : i32
    return %arg1, %c0_i32, %c0_i32_0 : i32, i32, i32
  }
  func.func @transform_12(%arg0: i32, %arg1: i32) -> (i32, i32, i32) {
    %c0_i32 = arith.constant 0 : i32
    %c0_i32_0 = arith.constant 0 : i32
    %c0_i32_1 = arith.constant 0 : i32
    return %arg1, %c0_i32, %c0_i32_0 : i32, i32, i32
  }
  func.func @transform_13(%arg0: i32, %arg1: i32) -> (i32, i32, i32) {
    %c0_i32 = arith.constant 0 : i32
    %c0_i32_0 = arith.constant 0 : i32
    %c0_i32_1 = arith.constant 0 : i32
    return %arg1, %c0_i32, %c0_i32_0 : i32, i32, i32
  }
  func.func @transform_14(%arg0: i32, %arg1: i32) -> (i32, i32, i32) {
    %c0_i32 = arith.constant 0 : i32
    %c0_i32_0 = arith.constant 0 : i32
    %c0_i32_1 = arith.constant 0 : i32
    return %arg1, %c0_i32, %c0_i32_0 : i32, i32, i32
  }
  func.func @transform_15(%arg0: i32, %arg1: i32) -> (i32, i32, i32) {
    %c0_i32 = arith.constant 0 : i32
    %c0_i32_0 = arith.constant 0 : i32
    %c0_i32_1 = arith.constant 0 : i32
    return %arg1, %c0_i32, %c0_i32_0 : i32, i32, i32
  }
  func.func @transform_16(%arg0: i32, %arg1: i32) -> (i32, i32, i32) {
    %c0_i32 = arith.constant 0 : i32
    %c0_i32_0 = arith.constant 0 : i32
    %c0_i32_1 = arith.constant 0 : i32
    return %arg1, %c0_i32, %c0_i32_0 : i32, i32, i32
  }
  func.func @transform_17(%arg0: i32, %arg1: i32) -> (i32, i32, i32) {
    %c0_i32 = arith.constant 0 : i32
    %c0_i32_0 = arith.constant 0 : i32
    %c0_i32_1 = arith.constant 0 : i32
    return %arg0, %c0_i32, %c0_i32_0 : i32, i32, i32
  }
}

</mosaic_0001>

<bundles_post_ra>
// kernel: transformer_forward.3
= control target key start
LH: loop header
LB: loop body
LE: loop exit
PB: predicated region body
PF: predicated region fallthrough
CT: control target
= control target key end

     0   :  { %12 = vsyncpa [#allocation3], 0  ;;  %s709_s0 = inlined_call_operand.vmem [shape: f32[2,8,32], index: 0, kind: input, shape index: {}]   ;;  %s710_s1 = inlined_call_operand.vmem [shape: bf16[32,128], index: 1, kind: input, shape index: {}]   ;;  %s711_s2 = inlined_call_operand.vmem [shape: f32[1,128], index: 2, kind: input, shape index: {}]   ;;  %s712_s3 = inlined_call_operand.vmem [shape: bf16[32,128], index: 3, kind: input, shape index: {}]   ;;  %s713_s4 = inlined_call_operand.vmem [shape: f32[1,128], index: 4, kind: input, shape index: {}]   ;;  %s714_s5 = inlined_call_operand.vmem [shape: f32[2,7,128], index: 5, kind: output, shape index: {0}]   ;;  %s715_s6 = inlined_call_operand.hbm [shape: f32[2,1,128], index: 6, kind: output, shape index: {1}]  }
   0x1   :  { %14 = vsyncpa [#allocation3 + $0x1], 0  ;;  %s603_s21 = smov 0   ;;  %s605_s22 = smov 0  }
   0x2   :  { %s607_s23 = smov 0   ;;  %s609_s24 = smov 0  }
   0x3 LB: > { %s624_s25 = sadd.s32 4294967295, %s566_s24   ;;  %s434_s26 = sadd.s32 4294967294, %s566_s24   ;;  %s566_s24 = sphi %s609_s24, %s721_s24   ;;  %s562_s23 = sphi %s607_s23, %s720_s23   ;;  %s558_s22 = sphi %s605_s22, %s719_s22   ;;  %s554_s21 = sphi %s603_s21, %s718_s21  }
   0x4   : > { %s628_s27 = sadd.s32 1, %s566_s24   ;;  %s163_s28 = sadd.s32 1, %s562_s23 }
   0x5   : > { %s160_s29 = ssub.s32 %s566_s24, %s628_s27  ;;  %p173_p0 = scmp.ne.s32.totalorder %s562_s23, %s558_s22 }
   0x6   : > { %p161_p1 = scmp.eq.s32.totalorder %s160_s29, 0  ;;  %p174_p2 = scmp.eq.s32.totalorder %s624_s25, 1 }
   0x7   : > { %p179_p3 = scmp.ne.s32.totalorder %s558_s22, %s554_s21  ;;  %p180_p4 = scmp.eq.s32.totalorder %s434_s26, 1 }
   0x8   : > { %s639_s30 = scalar_select %p161_p1, %s562_s23, %s163_s28  }
   0x9   : > { %p641_p5 = por %p174_p2, %p173_p0  ;;  %p645_p6 = por %p180_p4, %p179_p3 }
   0xa   : > { %p437_p7 = scmp.ge.s32.totalorder %s566_s24, 1  ;;  %p217_p8 = scmp.lt.s32.totalorder %s566_s24, 3 }
   0xc   : > { %p218_p9 = pnand %p437_p7, %p217_p8 }
   0xd   : > { %p249_p10 = scmp.lt.s32.totalorder (!%p218_p9), %s624_s25, 1  ;;  %s247_s9 = sand.u32 (!%p218_p9), 1, %s558_s22  }
   0xe   : > { %221 = sbr.rel (%p218_p9) target bundleno = 164 (0xa4), region = 40  ;;  %s351_s12 = scalar_lea.hbm (!%p218_p9), %s715_s6, %s624_s25 }
   0xf   : > { %s248_s19 = scalar_lea.vmem (!%p218_p9), [#allocation2], %s247_s9  ;;  %s524_s11 = scalar_lea.hbm (!%p218_p9), %s715_s6, 2 }
  0x10   : > { %s353_s20 = sshll.u32 (!%p218_p9), %s248_s19, 4  ;;  %s354_s20 = int_to_ptr.vmem [resolvable:$true] %s353_s20 }
  0x13   : > { %v461_v0 = vld [vmem:[%s710_s1 + $0x8] sm:$0xff]  ;;  %v460_v2 = vld [vmem:[%s710_s1] sm:$0xff]  ;;  %s250_s15 = scalar_select %p249_p10, %s624_s25, 1  ;;  %vm280_vm0 = vcmask 261120  }
  0x14   : > { %v463_v1 = vld [vmem:[%s712_s3 + $0x8] sm:$0xff]  ;;  %290 = vmatpush.bf16.msra.mxu0 %v461_v0  ;;  %v462_v3 = vld [vmem:[%s712_s3] sm:$0xff]  ;;  %s340_s25 = scalar_lea.sflag [#allocation3], %s247_s9 }
  0x15   : > { %327 = vmatpush.bf16.msra.mxu1 %v463_v1  ;;  %s438_s18 = sshll.u32 %s250_s15, 3  ;;  %v503_v8 = vld [vmem:[%s711_s2] ss:$0 sm:$0xff] }
  0x16   : > { %s252_s26 = scalar_lea.vmem %s709_s0, %s438_s18  ;;  %s256_s15 = scalar_lea.vmem %s714_s5, %s438_s18  ;;  %v302_v11 = vld [vmem:[%s713_s4] sm:$0x1] }
  0x17   : > { %v258_v4 = vld [vmem:[%s252_s26] sm:$0xff]  ;;  %s355_s26 = sshll.u32 %s351_s12, 4  ;;  %s356_s26 = int_to_ptr.hbm [resolvable:$true] %s355_s26 }
  0x18   : > { %291 = vmatpush.bf16.msra.mxu0 %v460_v2  ;;  %v259_v5 = vpack.c.bf16 %v258_v4, %v258_v4  ;;  %s518_s28 = sshra.s32 %s356_s26, 4  ;;  %s519_s28 = int_to_ptr.hbm [resolvable:$true] %s518_s28 }
  0x19   : > { %328 = vmatpush.bf16.msra.mxu1 %v462_v3  ;;  %s520_s18 = scalar_lea.hbm %s519_s28, 1  ;;  %p525_p0 = scmp.lt.s32.totalorder %s519_s28, %s715_s6 }
  0x1a   : > { %v303_v6 = vshrl.u32 %v259_v5, 16  ;;  %p521_p11 = scmp.ne.s32.totalorder %s519_s28, %s520_s18  ;;  %p526_p1 = scmp.lt.s32.totalorder %s524_s11, %s520_s18 }
  0x1b   : > { %448 = vmatmul.msk.bf16.vlgmr.msra.gmra.mxu0 %vm280_vm0, %v259_v5 }
  0x1c   : > { %v305_v7 = vrot.slane %v303_v6, 3  ;;  %p522_p12 = pnand %p521_p11, %p641_p5  ;;  %p527_p2 = por %p526_p1, %p525_p0 }
  0x1e   : > { %457 = vmatmul.msk.bf16.vlgmr.msra.gmra.mxu1 %vm280_vm0, %v305_v7  ;;  %p523_p13 = pneg %p522_p12 }
  0x20   : > { %p528_p3 = pnand %p527_p2, %p523_p13 }
  0x98   : > { %v293_v9 = vpop.f32.mrf.mxu0 }
  0x99   : > { %v294_v10 = vadd.f32 %v503_v8, %v293_v9 }
  0x9b   : > { %297 = vst [vmem:[%s256_s15] sm:$0x7f] %v294_v10  ;;  %v330_v12 = vpop.f32.mrf.mxu1 }
  0x9c   : > { %v331_v13 = vadd.f32 %v330_v12, %v302_v11 }
  0x9e   : > { %334 = vst [vmem:[%s248_s19] sm:$0x1] %v331_v13 }
  0xa0   : > { %v295_v14 = vpop.f32.mrf.mxu0 }
  0xa1   : > { %531 = shalt.err (!%p528_p3)
}
  0xa2   : > { %464 = dma.vmem_to_hbm [thread:$0]  (%p641_p5), %s354_s20, 16, %s356_s26, %s340_s25  }
  0xa3   : > { %v332_v15 = vpop.f32.mrf.mxu1 }
  0xa4 PF: > { %p470_p4 = scmp.ge.s32.totalorder %s566_s24, 2  ;;  %s374_s9 = sand.u32 1, %s554_s21  }
  0xa5   : > { %s375_s14 = scalar_lea.sflag [#allocation3], %s374_s9 }
  0xa6   : > { %p467_p7 = pnand %p470_p4, %p645_p6 }
  0xa8   : > { %p468_p8 = pneg %p467_p7 }
  0xaa   : > { %549 = dma.done.wait (%p468_p8), %s375_s14, 16  }
  0xab   : > { %551 = vsyncadd (%p468_p8), %s375_s14, 4294967280  ;;  %p17_p9 = scmp.ge.s32.totalorder %s628_s27, 4   ;;  %s718_s21 = smov %s558_s22 }
  0xac   : > { %s719_s22 = smov %s562_s23  ;;  %s720_s23 = smov %s639_s30 }
  0xad   : > { %s721_s24 = smov %s628_s27  ;;  %19 = sbr.rel (!%p17_p9) target bundleno = 3 (0x3), region = 87 }
  0xb2   :  { %380 = vsyncpa [#allocation3], 1 }
  0xb3   :  { %382 = vsyncpa [#allocation3 + $0x1], 1 }

// kernel: transformer_forward.2
= control target key start
LH: loop header
LB: loop body
LE: loop exit
PB: predicated region body
PF: predicated region fallthrough
CT: control target
= control target key end

     0   :  { %s2249_s24 = smov 0   ;;  %s2251_s25 = smov 0   ;;  %s2548_s0 = inlined_call_operand.vmem [shape: f32[2,8,32], index: 0, kind: input, shape index: {}]   ;;  %s2549_s1 = inlined_call_operand.vmem [shape: bf16[2,2,32,16], index: 1, kind: input, shape index: {}]   ;;  %s2550_s2 = inlined_call_operand.vmem [shape: bf16[2,2,32,16], index: 2, kind: input, shape index: {}]   ;;  %s2551_s3 = inlined_call_operand.vmem [shape: bf16[2,2,32,16], index: 3, kind: input, shape index: {}]   ;;  %s2552_s4 = inlined_call_operand.vmem [shape: f32[2,2,1,16], index: 4, kind: input, shape index: {}]   ;;  %s2553_s5 = inlined_call_operand.vmem [shape: f32[2,2,1,16], index: 5, kind: input, shape index: {}]   ;;  %s2554_s6 = inlined_call_operand.vmem [shape: f32[2,2,1,16], index: 6, kind: input, shape index: {}]   ;;  %s2555_s7 = inlined_call_operand.vmem [shape: bf16[2,2,16,32], index: 7, kind: input, shape index: {}]   ;;  %s2556_s8 = inlined_call_operand.vmem [shape: f32[2,1,32], index: 8, kind: input, shape index: {}]   ;;  %s2557_s9 = inlined_call_operand.vmem [shape: f32[2,1,32], index: 9, kind: input, shape index: {}]   ;;  %s2558_s10 = inlined_call_operand.vmem [shape: f32[2,1,32], index: 10, kind: input, shape index: {}]   ;;  %s2559_s11 = inlined_call_operand.vmem [shape: bf16[2,32,64], index: 11, kind: input, shape index: {}]   ;;  %s2560_s12 = inlined_call_operand.vmem [shape: f32[2,1,64], index: 12, kind: input, shape index: {}]   ;;  %s2561_s13 = inlined_call_operand.vmem [shape: bf16[2,64,32], index: 13, kind: input, shape index: {}]   ;;  %s2562_s14 = inlined_call_operand.vmem [shape: f32[2,1,32], index: 14, kind: input, shape index: {}]   ;;  %s2563_s15 = inlined_call_operand.vmem [shape: f32[2,1,32], index: 15, kind: input, shape index: {}]   ;;  %s2564_s16 = inlined_call_operand.vmem [shape: f32[2,1,32], index: 16, kind: input, shape index: {}]   ;;  %s2565_s17 = inlined_call_operand.vmem [shape: f32[2,8,32], index: 17, kind: output, shape index: {}]  }
   0x1   :  { %2574 = sst [smem:[#allocation10_spill]] %s2548_s0  ;;  %s2253_s26 = smov 0  }
   0x2   :  { %2575 = sst [smem:[#allocation11_spill]] %s2549_s1 }
   0x3   :  { %2576 = sst [smem:[#allocation12_spill]] %s2550_s2 }
   0x4   :  { %2577 = sst [smem:[#allocation13_spill]] %s2551_s3 }
   0x5   :  { %2578 = sst [smem:[#allocation14_spill]] %s2552_s4 }
   0x6   :  { %2579 = sst [smem:[#allocation15_spill]] %s2553_s5 }
   0x7   :  { %2580 = sst [smem:[#allocation16_spill]] %s2554_s6 }
   0x8   :  { %2581 = sst [smem:[#allocation17_spill]] %s2555_s7 }
   0x9   :  { %2582 = sst [smem:[#allocation18_spill]] %s2559_s11 }
   0xa   :  { %2583 = sst [smem:[#allocation19_spill]] %s2565_s17 }
   0xb LB: > { %2584 = sst [smem:[#allocation3_spill]] %s2148_s24  ;;  %s36_s27 = sadd.s32 1, %s2152_s25  ;;  %s2156_s26 = sphi %s2253_s26, %s27_s26   ;;  %s2152_s25 = sphi %s2251_s25, %s2612_s25   ;;  %s2148_s24 = sphi %s2249_s24, %s2611_s24  }
   0xc   : > { %2585 = sst [smem:[#allocation4_spill]] %s2152_s25  ;;  %p1901_p0 = scmp.ge.s32.totalorder %s2156_s26, 1 }
   0xd   : > { %2586 = sst [smem:[#allocation5_spill]] %s2156_s26  ;;  %p37_p1 = scmp.ge.s32.totalorder %s36_s27, 2 }
   0xe   : > { %p643_p2 = scmp.lt.s32.totalorder %s2156_s26, 3 }
   0xf   : > { %s2614_s27 = smov (%p37_p1, %s36_s27), 0 }
  0x10   : > { %2587 = sst [smem:[#allocation6_spill]] %s2614_s27  ;;  %p644_p3 = pnand %p1901_p0, %p643_p2 }
  0x12   : > { %647 = sbr.rel (%p644_p3) target bundleno = 2159 (0x86f), region = 88 }
  0x17   : > { %p764_p4 = scmp.lt.s32.totalorder %s2148_s24, 1  ;;  %s2588_s19 = sld [smem:[#allocation11_spill]] }
  0x18   : > { %s2590_s2 = sld [smem:[#allocation12_spill]] }
  0x19   : > { %s2271_s28 = scalar_select %p764_p4, %s2148_s24, 1 }
  0x1a   : > { %s2592_s3 = sld [smem:[#allocation13_spill]] }
  0x1b   : > { %s2040_s29 = sshll.u32 %s2271_s28, 5  ;;  %s1908_s0 = sshll.u32 %s2271_s28, 1 }
  0x1c   : > { %s2594_s4 = sld [smem:[#allocation14_spill]]  ;;  %s812_s23 = scalar_lea.vmem %s2560_s12, %s2271_s28 }
  0x1d   : > { %s2278_s1 = scalar_lea.vmem %s2588_s19, %s2040_s29  ;;  %s2595_s5 = sld [smem:[#allocation15_spill]] }
  0x1e   : > { %2589 = sst [smem:[#allocation7_spill]] %s2278_s1  ;;  %s2283_s22 = scalar_lea.vmem %s2590_s2, %s2040_s29 }
  0x1f   : > { %2591 = sst [smem:[#allocation8_spill]] %s2283_s22  ;;  %s2043_s2 = sshll.u32 %s2271_s28, 4 }
  0x20   : > { %s2288_s25 = scalar_lea.vmem %s2592_s3, %s2040_s29  ;;  %s2596_s6 = sld [smem:[#allocation16_spill]] }
  0x21   : > { %2593 = sst [smem:[#allocation9_spill]] %s2288_s25  ;;  %s820_s30 = scalar_lea.vmem %s2562_s14, %s2271_s28 }
  0x22   : > { %s2293_s24 = scalar_lea.vmem %s2594_s4, %s1908_s0  ;;  %s2597_s7 = sld [smem:[#allocation17_spill]] }
  0x23   : > { %s2298_s19 = scalar_lea.vmem %s2595_s5, %s1908_s0  ;;  %s2598_s11 = sld [smem:[#allocation18_spill]] }
  0x24   : > { %s823_s1 = scalar_lea.vmem %s2563_s15, %s2271_s28  ;;  %s826_s20 = scalar_lea.vmem %s2564_s16, %s2271_s28 }
  0x26   : > { %s2303_s21 = scalar_lea.vmem %s2596_s6, %s1908_s0 }
  0x28   : > { %s2313_s17 = scalar_lea.vmem %s2597_s7, %s2043_s2  ;;  %s2335_s7 = scalar_lea.vmem %s2561_s13, %s2040_s29 }
  0x29   : > { %s2326_s6 = scalar_lea.vmem %s2598_s11, %s2043_s2  ;;  %s2599_s11 = sld [smem:[#allocation3_spill]] }
  0x2f   : > { %p1917_p5 = scmp.ne.s32.totalorder %s2599_s11, 0 }
  0x30   : > { %s2600_s3 = sld [smem:[#allocation10_spill]] (!%p1917_p5) }
  0x31   : > { %837 = sbr.rel (%p1917_p5) target bundleno = 57 (0x39), region = 92 }
  0x36   : > { %v838_v0 = vld [vmem:[%s2600_s3] sm:$0xff]  ;;  %vm840_vm0 = vcmask 261120   ;;  %v839_v1 = vld [vmem:[%s2600_s3 + $0x8] sm:$0xff] }
  0x37   : > { %841 = vst.msk [vmem:[#allocation2] sm:$0xff] %vm840_vm0, %v838_v0 }
  0x38   : > { %842 = vst.msk [vmem:[#allocation2 + $0x8] sm:$0xff] %vm840_vm0, %v839_v1 }
  0x39 PF: > { %s2601_s4 = sld [smem:[#allocation8_spill]]  ;;  %vm871_vm1 = vcmask 261120   ;;  %v2091_v9 = vld [vmem:[%s2298_s19] ss:$0 sm:$0xff]  ;;  %vm963_vm2 = vcmask 130048   ;;  %v846_v27 = vlaneseq  ;;  %vm1008_vm4 = vcmask 64512   ;;  %s2605_s5 = scalar_lea.vmem %s2557_s9, %s2271_s28 }
  0x3a   : > { %s2602_s26 = sld [smem:[#allocation7_spill]]  ;;  %v2092_v12 = vld [vmem:[%s2293_s24] ss:$0 sm:$0xff]  ;;  %vm1036_vm5 = vcmask 1043456   ;;  %v2094_v0 = vld [vmem:[%s2298_s19 + $0x1] ss:$0 sm:$0xff]  ;;  %s2606_s2 = scalar_lea.vmem %s2558_s10, %s2271_s28 }
  0x3b   : > { %s2603_s11 = sld [smem:[#allocation9_spill]]  ;;  %v2382_v28 = vshrl.u32 %v846_v27, 7  ;;  %v2384_v29 = vand.u32 127, %v846_v27  ;;  %v2093_v44 = vld [vmem:[%s2303_s21] ss:$0 sm:$0xff] }
  0x3d   : > { %vm850_vm3 = vcmp.le.s32.totalorder %v2384_v29, %v2382_v28 }
  0x3e   : > { %v2358_v4 = vld [vmem:[#allocation2] sm:$0xff] }
  0x3f   : > { %v2049_v2 = vld [vmem:[%s2601_s4 + $0x8] sm:$0xff]  ;;  %v2048_v3 = vld [vmem:[%s2601_s4] sm:$0xff]  ;;  %v2056_v40 = vld [vmem:[%s2601_s4 + $0x18] sm:$0xff] }
  0x40   : > { %v2360_v5 = vld [vmem:[#allocation2 + $0x8] sm:$0xff]  ;;  %915 = vmatpush.bf16.msra.mxu1 %v2049_v2  ;;  %v2046_v7 = vld [vmem:[%s2602_s26] sm:$0xff]  ;;  %v2054_v41 = vld [vmem:[%s2602_s26 + $0x18] sm:$0xff] }
  0x41   : > { %v2047_v6 = vld [vmem:[%s2602_s26 + $0x8] sm:$0xff]  ;;  %v2366_v8 = vpack.c.bf16 %v2360_v5, %v2358_v4  ;;  %v2050_v26 = vld [vmem:[%s2603_s11] sm:$0xff]  ;;  %v2055_v42 = vld [vmem:[%s2601_s4 + $0x10] sm:$0xff] }
  0x42   : > { %881 = vmatpush.bf16.msra.mxu0 %v2047_v6  ;;  %v2051_v25 = vld [vmem:[%s2603_s11 + $0x8] sm:$0xff]  ;;  %v2053_v43 = vld [vmem:[%s2602_s26 + $0x10] sm:$0xff] }
  0x43   : > { %949 = vmatpush.bf16.msra.mxu2 %v2051_v25 }
  0x44   : > { %916 = vmatpush.bf16.msra.mxu1 %v2048_v3 }
  0x46   : > { %882 = vmatpush.bf16.msra.mxu0 %v2046_v7 }
  0x47   : > { %1935 = vmatmul.msk.bf16.vlgmr.msra.gmra.mxu1 %vm871_vm1, %v2366_v8  ;;  %950 = vmatpush.bf16.msra.mxu2 %v2050_v26  ;;  %v2052_v26 = vld [vmem:[%s2313_s17] sm:$0xff] }
  0x49   : > { %1926 = vmatmul.msk.bf16.vlgmr.msra.gmra.mxu0 %vm871_vm1, %v2366_v8 }
  0x4a   : > { %1944 = vmatmul.msk.bf16.vlgmr.msra.gmra.mxu2 %vm871_vm1, %v2366_v8 }
  0xc4   : > { %v918_v10 = vpop.f32.mrf.mxu1 }
  0xc5   : > { %v919_v11 = vadd.f32 %v2091_v9, %v918_v10 }
  0xc6   : > { %v884_v13 = vpop.f32.mrf.mxu0 }
  0xc7   : > { %v959_v14 = vpack.c.bf16 %v919_v11, %v919_v11  ;;  %v885_v16 = vadd.f32 %v2092_v12, %v884_v13 }
  0xc9   : > { %v968_v15 = vsel %vm963_vm2, %v959_v14, 0  ;;  %v957_v18 = vpack.c.bf16 %v885_v16, %v885_v16 }
  0xca   : > { %977 = vmatpush.bf16.xpose.msra.mxu3 %v968_v15 }
  0xcc   : > { %v920_v17 = vpop.f32.mrf.mxu1 }
  0xcd   : > { %v921_v19 = vadd.f32 %v2091_v9, %v920_v17  ;;  %v952_v45 = vpop.f32.mrf.mxu2 }
  0xce   : > { %v886_v21 = vpop.f32.mrf.mxu0  ;;  %v953_v46 = vadd.f32 %v2093_v44, %v952_v45 }
  0xcf   : > { %v960_v20 = vpack.c.bf16 %v921_v19, %v921_v19  ;;  %v887_v23 = vadd.f32 %v2092_v12, %v886_v21  ;;  %v2095_v12 = vld [vmem:[%s2293_s24 + $0x1] ss:$0 sm:$0xff] }
  0xd0   : > { %v961_v49 = vpack.c.bf16 %v953_v46, %v953_v46 }
  0xd1   : > { %1945 = vmatmul.msk.bf16.vlgmr.msra.gmra.mxu3 %vm963_vm2, %v957_v18  ;;  %v987_v22 = vsel %vm963_vm2, %v960_v20, 0  ;;  %v958_v24 = vpack.c.bf16 %v887_v23, %v887_v23 }
  0xd2   : > { %996 = vmatpush.bf16.xpose.msrb.mxu0 %v987_v22  ;;  %1103 = vmatpush.bf16.msrb.mxu3 %v2054_v41  ;;  %v1038_v53 = vsel %vm1036_vm5, %v961_v49, 0 }
  0xd3   : > { %1047 = vmatpush.bf16.msrb.mxu1 %v1038_v53 }
  0xd5   : > { %v954_v55 = vpop.f32.mrf.mxu2 }
  0xd6   : > { %1104 = vmatpush.bf16.msrb.mxu3 %v2053_v43  ;;  %v955_v56 = vadd.f32 %v2093_v44, %v954_v55 }
  0xd8   : > { %v962_v57 = vpack.c.bf16 %v955_v56, %v955_v56 }
  0xd9   : > { %1946 = vmatmul.msk.bf16.vlgmr.msrb.gmra.mxu0 %vm963_vm2, %v958_v24 }
  0xda   : > { %1139 = vmatpush.bf16.msra.mxu0 %v2056_v40  ;;  %v1057_v59 = vsel %vm1036_vm5, %v962_v57, 0 }
  0xdb   : > { %1066 = vmatpush.bf16.msrb.mxu2 %v1057_v59 }
  0xde   : > { %1140 = vmatpush.bf16.msra.mxu0 %v2055_v42 }
  0xe1   : > { %1962 = vmatmul.msk.bf16.vlgmr.msrb.gmra.mxu3 %vm871_vm1, %v2366_v8 }
  0xe9   : > { %1976 = vmatmul.msk.bf16.vlgmr.msra.gmra.mxu0 %vm871_vm1, %v2366_v8 }
 0x154   : > { %v979_v30 = vpop.f32.mrf.mxu3 }
 0x155   : > { %v1002_v31 = vmul.f32 0.25, %v979_v30 }
 0x156   : > { %v998_v32 = vpop.f32.mrf.mxu0 }
 0x157   : > { %v1003_v33 = vmul.f32 0.25, %v998_v32  ;;  %v1006_v34 = vsel %vm850_vm3, %v1002_v31, -1e+30  ;;  %v2058_v32 = vld [vmem:[%s2603_s11 + $0x18] sm:$0xff] }
 0x158   : > { %v1009_v35 = vsel %vm1008_vm4, %v1006_v34, -inf  ;;  %1175 = vmatpush.bf16.msra.mxu1 %v2058_v32 }
 0x159   : > { %1010 = vmax.xlane.f32.xlu1 %v1009_v35  ;;  %v1007_v36 = vsel %vm850_vm3, %v1003_v33, -1e+30  ;;  %v2057_v33 = vld [vmem:[%s2603_s11 + $0x10] sm:$0xff] }
 0x15a   : > { %v1012_v37 = vsel %vm1008_vm4, %v1007_v36, -inf }
 0x15b   : > { %1013 = vmax.xlane.f32.xlu0 %v1012_v37 }
 0x15c   : > { %v981_v38 = vpop.f32.mrf.mxu3  ;;  %1176 = vmatpush.bf16.msra.mxu1 %v2057_v33 }
 0x15e   : > { %v1000_v39 = vpop.f32.mrf.mxu0 }
 0x164   : > { %v1106_v2 = vpop.f32.mrf.mxu3 }
 0x165   : > { %v1107_v24 = vadd.f32 %v2095_v12, %v1106_v2 }
 0x166   : > { %v1142_v63 = vpop.f32.mrf.mxu0 }
 0x167   : > { %v1143_v3 = vadd.f32 %v2094_v0, %v1142_v63  ;;  %v1183_v25 = vpack.c.bf16 %v1107_v24, %v1107_v24 }
 0x169   : > { %v1185_v7 = vpack.c.bf16 %v1143_v3, %v1143_v3 }
 0x16b   : > { %v1193_v10 = vsel %vm963_vm2, %v1185_v7, 0 }
 0x16c   : > { %1202 = vmatpush.bf16.xpose.msra.mxu2 %v1193_v10  ;;  %v1108_v13 = vpop.f32.mrf.mxu3 }
 0x16d   : > { %v1109_v14 = vadd.f32 %v2095_v12, %v1108_v13 }
 0x16e   : > { %v1144_v1 = vpop.f32.mrf.mxu0 }
 0x16f   : > { %v1145_v6 = vadd.f32 %v2094_v0, %v1144_v1  ;;  %v1184_v15 = vpack.c.bf16 %v1109_v14, %v1109_v14 }
 0x171   : > { %v1186_v9 = vpack.c.bf16 %v1145_v6, %v1145_v6 }
 0x173   : > { %v1212_v11 = vsel %vm963_vm2, %v1186_v9, 0  ;;  %v2059_v9 = vld [vmem:[%s2313_s17 + $0x8] sm:$0xff] }
 0x174   : > { %1221 = vmatpush.bf16.xpose.msra.mxu3 %v1212_v11 }
 0x17b   : > { %1992 = vmatmul.msk.bf16.vlgmr.msra.gmra.mxu3 %vm963_vm2, %v1184_v15 }
 0x17c   : > { %1336 = vmatpush.bf16.msrb.mxu3 %v2052_v26 }
 0x1cc   : > { %v1011_v47 = vpop.xlane.xlu1 %1010 }
 0x1cd   : > { %v1015_v48 = vsub.f32 %v1006_v34, %v1011_v47 }
 0x1ce   : > { %v1014_v50 = vpop.xlane.xlu0 %1013 }
 0x1cf   : > { %v1017_v51 = vmul.f32 1.442695, %v1015_v48  ;;  %v1016_v52 = vsub.f32 %v1007_v36, %v1014_v50 }
 0x1d1   : > { %2104 = vpow2.f32 %v1017_v51  ;;  %v1019_v54 = vmul.f32 1.442695, %v1016_v52 }
 0x1d3   : > { %2106 = vpow2.f32 %v1019_v54 }
 0x1d7   : > { %v2105_v58 = vpop.eup %2104 }
 0x1d8   : > { %v1021_v60 = vsel %vm1008_vm4, %v2105_v58, 0.0 }
 0x1d9   : > { %v2107_v61 = vpop.eup %2106  ;;  %1022 = vadd.xlane.f32.xlu1 %v1021_v60 }
 0x1da   : > { %v1024_v62 = vsel %vm1008_vm4, %v2107_v61, 0.0 }
 0x1db   : > { %1025 = vadd.xlane.f32.xlu0 %v1024_v62 }
 0x1fe   : > { %v1223_v27 = vpop.f32.mrf.mxu3 }
 0x1ff   : > { %v1228_v42 = vmul.f32 0.25, %v1223_v27 }
 0x201   : > { %v1230_v44 = vsel %vm850_vm3, %v1228_v42, -1e+30 }
 0x202   : > { %v1234_v45 = vsel %vm1008_vm4, %v1230_v44, -inf }
 0x206   : > { %v1225_v30 = vpop.f32.mrf.mxu3 }
 0x207   : > { %v2158_v30 = vmov 32.0  }
 0x24c   : > { %v1023_v16 = vpop.xlane.xlu1 %1022 }
 0x24d   : > { %2108 = vrcp.f32 %v1023_v16 }
 0x24e   : > { %v1026_v17 = vpop.xlane.xlu0 %1025 }
 0x24f   : > { %2110 = vrcp.f32 %v1026_v17 }
 0x253   : > { %v2109_v18 = vpop.eup %2108 }
 0x254   : > { %v1029_v19 = vmul.f32 %v2109_v18, %v2105_v58 }
 0x255   : > { %v2111_v20 = vpop.eup %2110 }
 0x256   : > { %v1030_v21 = vmul.f32 %v2111_v20, %v2107_v61  ;;  %v1031_v22 = vpack.c.bf16 %v1029_v19, %v1029_v19 }
 0x258   : > { %1947 = vmatmul.msk.bf16.vlgmr.msrb.gmra.mxu1 %vm1008_vm4, %v1031_v22  ;;  %v1032_v23 = vpack.c.bf16 %v1030_v21, %v1030_v21 }
 0x25a   : > { %1948 = vmatmul.msk.bf16.vlgmr.msrb.gmra.mxu2 %vm1008_vm4, %v1032_v23 }
 0x25b   : > { %1313 = vmatpush.bf16.msrb.mxu2 %v2059_v9 }
 0x268   : > { %1990 = vmatmul.msk.bf16.vlgmr.msra.gmra.mxu1 %vm871_vm1, %v2366_v8  ;;  %v2096_v8 = vld [vmem:[%s2303_s21 + $0x1] ss:$0 sm:$0xff]  ;;  %s2604_s21 = scalar_lea.vmem %s2556_s8, %s2271_s28 }
 0x269   : > { %v2097_v16 = vld [vmem:[%s2604_s21] ss:$0 sm:$0xff] }
 0x26a   : > { %1991 = vmatmul.msk.bf16.vlgmr.msra.gmra.mxu2 %vm963_vm2, %v1183_v25 }
 0x2d5   : > { %v1049_v31 = vpop.f32.mrf.mxu1 }
 0x2dd   : > { %v1051_v34 = vpop.f32.mrf.mxu1  ;;  %v1068_v35 = vpop.f32.mrf.mxu2 }
 0x2de   : > { %v1072_v36 = vpack.c.bf16 %v1068_v35, %v1049_v31 }
 0x2e0   : > { %2006 = vmatmul.msk.bf16.vlgmr.msrb.gmra.mxu3 %vm963_vm2, %v1072_v36 }
 0x2e5   : > { %v1070_v37 = vpop.f32.mrf.mxu2  ;;  %v1178_v46 = vpop.f32.mrf.mxu1 }
 0x2e6   : > { %v1179_v47 = vadd.f32 %v2096_v8, %v1178_v46 }
 0x2e8   : > { %v1187_v48 = vpack.c.bf16 %v1179_v47, %v1179_v47 }
 0x2ea   : > { %v1259_v50 = vsel %vm1036_vm5, %v1187_v48, 0  ;;  %v2060_v48 = vld [vmem:[%s2326_s6] sm:$0xff] }
 0x2eb   : > { %1268 = vmatpush.bf16.msrb.mxu0 %v1259_v50 }
 0x2ed   : > { %v1204_v38 = vpop.f32.mrf.mxu2  ;;  %v1180_v53 = vpop.f32.mrf.mxu1 }
 0x2ee   : > { %v1227_v39 = vmul.f32 0.25, %v1204_v38  ;;  %v1181_v54 = vadd.f32 %v2096_v8, %v1180_v53 }
 0x2f0   : > { %v1229_v40 = vsel %vm850_vm3, %v1227_v39, -1e+30  ;;  %v1188_v55 = vpack.c.bf16 %v1181_v54, %v1181_v54 }
 0x2f1   : > { %v1231_v41 = vsel %vm1008_vm4, %v1229_v40, -inf }
 0x2f2   : > { %1232 = vmax.xlane.f32.xlu2 %v1231_v41  ;;  %v1278_v28 = vsel %vm1036_vm5, %v1188_v55, 0 }
 0x2f3   : > { %1287 = vmatpush.bf16.msrb.mxu1 %v1278_v28 }
 0x2f5   : > { %v1206_v43 = vpop.f32.mrf.mxu2 }
 0x2fa   : > { %1235 = vmax.xlane.f32.xlu2 %v1234_v45  ;;  %v2061_v45 = vld [vmem:[%s2326_s6 + $0x8] sm:$0xff] }
 0x2fb   : > { %1444 = vmatpush.bf16.msra.mxu0 %v2061_v45 }
 0x2ff   : > { %1445 = vmatpush.bf16.msra.mxu0 %v2060_v48 }
 0x363   : > { %v1338_v15 = vpop.f32.mrf.mxu3 }
 0x365   : > { %v1233_v49 = vpop.xlane.xlu2 %1232 }
 0x366   : > { %v1237_v51 = vsub.f32 %v1229_v40, %v1233_v49 }
 0x368   : > { %v1239_v52 = vmul.f32 1.442695, %v1237_v51 }
 0x36a   : > { %2112 = vpow2.f32 %v1239_v52 }
 0x36b   : > { %v1340_v22 = vpop.f32.mrf.mxu3 }
 0x36d   : > { %v1236_v56 = vpop.xlane.xlu2 %1235 }
 0x36e   : > { %v1238_v29 = vsub.f32 %v1230_v44, %v1236_v56 }
 0x370   : > { %v2113_v57 = vpop.eup %2112  ;;  %v1241_v58 = vmul.f32 1.442695, %v1238_v29 }
 0x371   : > { %v1243_v59 = vsel %vm1008_vm4, %v2113_v57, 0.0 }
 0x372   : > { %2114 = vpow2.f32 %v1241_v58  ;;  %1244 = vadd.xlane.f32.xlu0 %v1243_v59 }
 0x378   : > { %v2115_v60 = vpop.eup %2114 }
 0x379   : > { %v1246_v61 = vsel %vm1008_vm4, %v2115_v60, 0.0 }
 0x37a   : > { %1247 = vadd.xlane.f32.xlu1 %v1246_v61 }
 0x3e5   : > { %v1245_v62 = vpop.xlane.xlu0 %1244 }
 0x3e6   : > { %2116 = vrcp.f32 %v1245_v62  ;;  %v2098_v62 = vld [vmem:[%s2605_s5] ss:$0 sm:$0xff] }
 0x3ec   : > { %v2117_v63 = vpop.eup %2116 }
 0x3ed   : > { %v1251_v0 = vmul.f32 %v2117_v63, %v2113_v57  ;;  %v1248_v1 = vpop.xlane.xlu1 %1247 }
 0x3ee   : > { %2118 = vrcp.f32 %v1248_v1 }
 0x3ef   : > { %v1253_v2 = vpack.c.bf16 %v1251_v0, %v1251_v0  ;;  %2120 = vrcp.f32 %v2158_v30 }
 0x3f1   : > { %1993 = vmatmul.msk.bf16.vlgmr.msrb.gmra.mxu0 %vm1008_vm4, %v1253_v2  ;;  %v2099_v2 = vld [vmem:[%s2606_s2] ss:$0 sm:$0xff] }
 0x3f4   : > { %v2119_v3 = vpop.eup %2118 }
 0x3f5   : > { %v1252_v6 = vmul.f32 %v2119_v3, %v2115_v60  ;;  %v2121_v31 = vpop.eup %2120 }
 0x3f6   : > { %v1360_v32 = vmul.f32 32.0, %v2121_v31  ;;  %vm1364_vm6 = vweird.f32 %v2121_v31 }
 0x3f7   : > { %v1254_v7 = vpack.c.bf16 %v1252_v6, %v1252_v6 }
 0x3f8   : > { %v1361_v33 = vsub.f32 1.0, %v1360_v32 }
 0x3f9   : > { %1994 = vmatmul.msk.bf16.vlgmr.msrb.gmra.mxu1 %vm1008_vm4, %v1254_v7 }
 0x3fa   : > { %v1362_v34 = vmul.f32 %v2121_v31, %v1361_v33  ;;  %v2065_v33 = vld [vmem:[%s2335_s7 + $0x18] sm:$0xff] }
 0x3fb   : > { %1585 = vmatpush.bf16.msra.mxu1 %v2065_v33 }
 0x46e   : > { %v1270_v10 = vpop.f32.mrf.mxu0 }
 0x476   : > { %v1272_v11 = vpop.f32.mrf.mxu0  ;;  %v1289_v12 = vpop.f32.mrf.mxu1 }
 0x477   : > { %v1293_v13 = vpack.c.bf16 %v1289_v12, %v1270_v10  ;;  %v2100_v12 = vld [vmem:[%s812_s23] ss:$0 sm:$0xff] }
 0x479   : > { %2001 = vmatmul.msk.bf16.vlgmr.msrb.gmra.mxu2 %vm963_vm2, %v1293_v13 }
 0x47e   : > { %v1291_v14 = vpop.f32.mrf.mxu1 }
 0x4fc   : > { %v1315_v17 = vpop.f32.mrf.mxu2 }
 0x4fd   : > { %v1339_v18 = vadd.f32 %v1338_v15, %v1315_v17 }
 0x4ff   : > { %v1347_v19 = vadd.f32 %v2097_v16, %v1339_v18 }
 0x501   : > { %v1349_v20 = vadd.f32 %v1347_v19, %v2358_v4  ;;  %v1363_v4 = vadd.f32 %v2121_v31, %v1362_v34 }
 0x503   : > { %v1353_v21 = vsel %vm871_vm1, %v1349_v20, 0.0  ;;  %v2449_v35 = vsel %vm1364_vm6, %v2121_v31, %v1363_v4  ;;  %vm1577_vm6 = vcmask 523264  }
 0x504   : > { %1354 = vadd.xlane.f32.xlu2 %v1353_v21  ;;  %v1317_v23 = vpop.f32.mrf.mxu2 }
 0x505   : > { %v1341_v24 = vadd.f32 %v1340_v22, %v1317_v23 }
 0x507   : > { %v1348_v25 = vadd.f32 %v2097_v16, %v1341_v24 }
 0x509   : > { %v1350_v26 = vadd.f32 %v1348_v25, %v2360_v5 }
 0x50b   : > { %v1356_v27 = vsel %vm871_vm1, %v1350_v26, 0.0 }
 0x50c   : > { %1357 = vadd.xlane.f32.xlu0 %v1356_v27 }
 0x577   : > { %v1355_v36 = vpop.xlane.xlu2 %1354 }
 0x578   : > { %v1366_v37 = vmul.f32 %v2449_v35, %v1355_v36 }
 0x57a   : > { %v1368_v38 = vsub.f32 %v1349_v20, %v1366_v37 }
 0x57c   : > { %v1370_v5 = vmul.f32 %v1368_v38, %v1368_v38 }
 0x57e   : > { %v1372_v39 = vsel %vm871_vm1, %v1370_v5, 0.0 }
 0x57f   : > { %1373 = vadd.xlane.f32.xlu1 %v1372_v39  ;;  %v1358_v40 = vpop.xlane.xlu0 %1357 }
 0x580   : > { %v1367_v41 = vmul.f32 %v2449_v35, %v1358_v40  ;;  %v2064_v40 = vld [vmem:[%s2335_s7 + $0x10] sm:$0xff] }
 0x581   : > { %1586 = vmatpush.bf16.msra.mxu1 %v2064_v40 }
 0x582   : > { %v1369_v42 = vsub.f32 %v1350_v26, %v1367_v41 }
 0x584   : > { %v1371_v43 = vmul.f32 %v1369_v42, %v1369_v42 }
 0x586   : > { %v1375_v44 = vsel %vm871_vm1, %v1371_v43, 0.0 }
 0x587   : > { %1376 = vadd.xlane.f32.xlu2 %v1375_v44 }
 0x5f2   : > { %v1374_v8 = vpop.xlane.xlu1 %1373 }
 0x5f3   : > { %v1378_v46 = vmul.f32 %v1374_v8, %v2449_v35 }
 0x5f5   : > { %v1380_v47 = vadd.f32 1e-05, %v1378_v46 }
 0x5f7   : > { %2122 = vrsqrt.f32 %v1380_v47  ;;  %vm1388_vm8 = vweird.f32 %v1380_v47 }
 0x5fa   : > { %v1377_v49 = vpop.xlane.xlu2 %1376 }
 0x5fb   : > { %v1379_v50 = vmul.f32 %v1377_v49, %v2449_v35 }
 0x5fd   : > { %v2123_v51 = vpop.eup %2122  ;;  %v1381_v52 = vadd.f32 1e-05, %v1379_v50 }
 0x5fe   : > { %v1383_v53 = vmul.f32 %v2123_v51, %v1380_v47  ;;  %vm1389_vm7 = vweird.f32 %v2123_v51  ;;  %v2063_v47 = vld [vmem:[%s2335_s7 + $0x8] sm:$0xff] }
 0x5ff   : > { %2124 = vrsqrt.f32 %v1381_v52  ;;  %vm1390_vm9 = vmor %vm1388_vm8, %vm1389_vm7  ;;  %vm1398_vm11 = vweird.f32 %v1381_v52  ;;  %1587 = vmatpush.bf16.msra.mxu1 %v2063_v47 }
 0x600   : > { %v1384_v54 = vmul.f32 %v2123_v51, %v1383_v53  ;;  %v2062_v53 = vld [vmem:[%s2335_s7] sm:$0xff] }
 0x602   : > { %v1385_v55 = vmul.f32 0.5, %v1384_v54 }
 0x603   : > { %1588 = vmatpush.bf16.msra.mxu1 %v2062_v53 }
 0x604   : > { %v1386_v56 = vsub.f32 1.5, %v1385_v55 }
 0x605   : > { %v2125_v28 = vpop.eup %2124 }
 0x606   : > { %v1387_v29 = vmul.f32 %v2123_v51, %v1386_v56  ;;  %v1393_v57 = vmul.f32 %v2125_v28, %v1381_v52  ;;  %vm1399_vm10 = vweird.f32 %v2125_v28 }
 0x607   : > { %vm1400_vm12 = vmor %vm1398_vm11, %vm1399_vm10 }
 0x608   : > { %v1394_v58 = vmul.f32 %v2125_v28, %v1393_v57  ;;  %v1391_v59 = vsel %vm1390_vm9, %v2123_v51, %v1387_v29 }
 0x609   : > { %v1402_v63 = vmul.f32 %v1391_v59, %v1368_v38 }
 0x60a   : > { %v1395_v60 = vmul.f32 0.5, %v1394_v58 }
 0x60b   : > { %v1407_v3 = vmul.f32 %v2098_v62, %v1402_v63 }
 0x60c   : > { %v1396_v61 = vsub.f32 1.5, %v1395_v60 }
 0x60d   : > { %v2469_v9 = vadd.f32 %v2099_v2, %v1407_v3 }
 0x60e   : > { %v1397_v0 = vmul.f32 %v2125_v28, %v1396_v61 }
 0x610   : > { %v1401_v1 = vsel %vm1400_vm12, %v2125_v28, %v1397_v0 }
 0x611   : > { %v1403_v6 = vmul.f32 %v1401_v1, %v1369_v42 }
 0x613   : > { %v1408_v7 = vmul.f32 %v2098_v62, %v1403_v6 }
 0x615   : > { %v2471_v10 = vadd.f32 %v2099_v2, %v1408_v7 }
 0x617   : > { %v1414_v11 = vpack.c.bf16 %v2471_v10, %v2469_v9 }
 0x619   : > { %2015 = vmatmul.msk.bf16.vlgmr.msra.gmra.mxu0 %vm871_vm1, %v1414_v11 }
 0x696   : > { %v1447_v13 = vpop.f32.mrf.mxu0 }
 0x697   : > { %v2481_v14 = vadd.f32 %v2100_v12, %v1447_v13 }
 0x699   : > { %v2484_v15 = vmul.f32 0.70710677, %v2481_v14 }
 0x69b   : > { %v1456_v16 = vmul.f32 %v2484_v15, %v2484_v15 }
 0x69d   : > { %v1457_v17 = vmin.f32 %v1456_v16, 16.0 }
 0x69e   : > { %v1449_v18 = vpop.f32.mrf.mxu0 }
 0x69f   : > { %v1458_v19 = vmul.f32 2.1237322e-06, %v1457_v17  ;;  %v1469_v20 = vmul.f32 3.8918573e-05, %v1457_v17  ;;  %v2488_v21 = vadd.f32 %v2100_v12, %v1449_v18 }
 0x6a1   : > { %v1459_v22 = vadd.f32 0.00028619796, %v1458_v19  ;;  %v1470_v23 = vadd.f32 0.001143296, %v1469_v20  ;;  %v2491_v24 = vmul.f32 0.70710677, %v2488_v21 }
 0x6a3   : > { %v1471_v25 = vmul.f32 %v1470_v23, %v1457_v17  ;;  %v1496_v26 = vmul.f32 %v2491_v24, %v2491_v24  ;;  %v1460_v27 = vmul.f32 %v1459_v22, %v1457_v17 }
 0x6a5   : > { %v1472_v30 = vadd.f32 0.014752088, %v1471_v25  ;;  %v1497_v31 = vmin.f32 %v1496_v26, 16.0  ;;  %v1461_v36 = vadd.f32 0.0036580483, %v1460_v27 }
 0x6a7   : > { %v1473_v32 = vmul.f32 %v1472_v30, %v1457_v17  ;;  %v1498_v34 = vmul.f32 2.1237322e-06, %v1497_v31  ;;  %v1509_v4 = vmul.f32 3.8918573e-05, %v1497_v31  ;;  %v1462_v43 = vmul.f32 %v1461_v36, %v1457_v17 }
 0x6a9   : > { %v1474_v37 = vadd.f32 0.112945676, %v1473_v32  ;;  %v1499_v38 = vadd.f32 0.00028619796, %v1498_v34  ;;  %v1510_v5 = vadd.f32 0.001143296, %v1509_v4 }
 0x6aa   : > { %v1463_v49 = vadd.f32 0.05243302, %v1462_v43 }
 0x6ab   : > { %v1475_v39 = vmul.f32 %v1474_v37, %v1457_v17  ;;  %v1500_v41 = vmul.f32 %v1499_v38, %v1497_v31  ;;  %v1511_v42 = vmul.f32 %v1510_v5, %v1497_v31  ;;  %v1452_v38 = vmul.f32 0.5, %v2481_v14 }
 0x6ac   : > { %v1464_v55 = vmul.f32 %v1463_v49, %v1457_v17  ;;  %v1453_v5 = vmul.f32 0.5, %v2488_v21 }
 0x6ad   : > { %v1476_v44 = vadd.f32 0.4994258, %v1475_v39  ;;  %v1501_v45 = vadd.f32 0.0036580483, %v1500_v41  ;;  %v1512_v8 = vadd.f32 0.014752088, %v1511_v42 }
 0x6ae   : > { %v1465_v58 = vadd.f32 0.18741608, %v1464_v55 }
 0x6af   : > { %v1477_v46 = vmul.f32 %v1476_v44, %v1457_v17  ;;  %v1513_v48 = vmul.f32 %v1512_v8, %v1497_v31  ;;  %v1502_v51 = vmul.f32 %v1501_v45, %v1497_v31 }
 0x6b0   : > { %v1466_v63 = vmul.f32 %v1465_v58, %v1457_v17 }
 0x6b1   : > { %v1478_v50 = vadd.f32 1.0, %v1477_v46  ;;  %v1514_v52 = vadd.f32 0.112945676, %v1513_v48  ;;  %v1503_v56 = vadd.f32 0.05243302, %v1502_v51 }
 0x6b2   : > { %v1467_v7 = vadd.f32 1.1283791, %v1466_v63 }
 0x6b3   : > { %2126 = vrcp.f32 %v1478_v50  ;;  %v1515_v54 = vmul.f32 %v1514_v52, %v1497_v31  ;;  %v1504_v60 = vmul.f32 %v1503_v56, %v1497_v31  ;;  %v1490_v1 = vand.u32 2147483648, %v1478_v50 }
 0x6b4   : > { %v1488_v3 = vand.u32 2147483647, %v1478_v50  ;;  %vm1484_vm14 = vweird.f32 %v1478_v50  ;;  %v1468_v20 = vmul.f32 %v1467_v7, %v2484_v15 }
 0x6b5   : > { %v1516_v28 = vadd.f32 0.4994258, %v1515_v54  ;;  %v1505_v2 = vadd.f32 0.18741608, %v1504_v60  ;;  %v1491_v13 = vor.u32 1.1754944e-38, %v1490_v1 }
 0x6b6   : > { %vm1489_vm0 = vcmp.eq.f32.partialorder %v1488_v3, 8.507059e+37 }
 0x6b7   : > { %v1517_v29 = vmul.f32 %v1516_v28, %v1497_v31  ;;  %v1506_v16 = vmul.f32 %v1505_v2, %v1497_v31 }
 0x6b9   : > { %v2127_v57 = vpop.eup %2126  ;;  %v1518_v61 = vadd.f32 1.0, %v1517_v29  ;;  %v1507_v17 = vadd.f32 1.1283791, %v1506_v16 }
 0x6ba   : > { %v1480_v59 = vmul.f32 %v2127_v57, %v1478_v50  ;;  %vm1485_vm13 = vweird.f32 %v2127_v57 }
 0x6bb   : > { %2128 = vrcp.f32 %v1518_v61  ;;  %vm1486_vm15 = vmor %vm1484_vm14, %vm1485_vm13  ;;  %v1530_v23 = vand.u32 2147483648, %v1518_v61  ;;  %v1528_v27 = vand.u32 2147483647, %v1518_v61  ;;  %vm1524_vm3 = vweird.f32 %v1518_v61 }
 0x6bc   : > { %v1481_v62 = vsub.f32 1.0, %v1480_v59  ;;  %v1508_v31 = vmul.f32 %v1507_v17, %v2491_v24  ;;  %v2101_v24 = vld [vmem:[%s820_s30] ss:$0 sm:$0xff] }
 0x6bd   : > { %v1531_v32 = vor.u32 1.1754944e-38, %v1530_v23  ;;  %vm1529_vm5 = vcmp.eq.f32.partialorder %v1528_v27, 8.507059e+37 }
 0x6be   : > { %v1482_v0 = vmul.f32 %v2127_v57, %v1481_v62 }
 0x6c0   : > { %v1483_v6 = vadd.f32 %v2127_v57, %v1482_v0 }
 0x6c1   : > { %v2129_v11 = vpop.eup %2128 }
 0x6c2   : > { %v1487_v12 = vsel %vm1486_vm15, %v2127_v57, %v1483_v6  ;;  %v1520_v18 = vmul.f32 %v2129_v11, %v1518_v61  ;;  %vm1525_vm2 = vweird.f32 %v2129_v11  ;;  %v2102_v6 = vld [vmem:[%s823_s1] ss:$0 sm:$0xff]  ;;  %s2607_s1 = sld [smem:[#allocation3_spill]] }
 0x6c3   : > { %v1492_v19 = vsel %vm1489_vm0, %v1491_v13, %v1487_v12  ;;  %vm1526_vm4 = vmor %vm1524_vm3, %vm1525_vm2 }
 0x6c4   : > { %v1521_v22 = vsub.f32 1.0, %v1520_v18  ;;  %v1493_v25 = vmul.f32 %v1492_v19, %v1468_v20 }
 0x6c6   : > { %v1522_v26 = vmul.f32 %v2129_v11, %v1521_v22  ;;  %v2016_v33 = vclamps-f32 %v1493_v25, 1.0 }
 0x6c8   : > { %v1523_v30 = vadd.f32 %v2129_v11, %v1522_v26  ;;  %v1536_v15 = vadd.f32 1.0, %v2016_v33  ;;  %p2035_p6 = scmp.ne.s32.totalorder %s2607_s1, 1 }
 0x6c9   : > { %s2608_s26 = sld [smem:[#allocation19_spill]] (!%p2035_p6) }
 0x6ca   : > { %v1527_v34 = vsel %vm1526_vm4, %v2129_v11, %v1523_v30  ;;  %v1538_v40 = vmul.f32 %v1536_v15, %v1452_v38  ;;  %v2103_v11 = vld [vmem:[%s826_s20] ss:$0 sm:$0xff] }
 0x6cb   : > { %v1532_v4 = vsel %vm1529_vm5, %v1531_v32, %v1527_v34 }
 0x6cc   : > { %v1533_v36 = vmul.f32 %v1532_v4, %v1508_v31 }
 0x6ce   : > { %v2017_v37 = vclamps-f32 %v1533_v36, 1.0 }
 0x6cf   : > { %s2609_s11 = smov (!%p2035_p6), %s2608_s26 }
 0x6d0   : > { %v1537_v39 = vadd.f32 1.0, %v2017_v37 }
 0x6d2   : > { %v1539_v41 = vmul.f32 %v1537_v39, %v1453_v5 }
 0x6d4   : > { %v1540_v42 = vpack.c.bf16 %v1539_v41, %v1538_v40 }
 0x6d6   : > { %2034 = vmatmul.msk.bf16.vlgmr.msra.gmra.mxu1 %vm1577_vm6, %v1540_v42 }
 0x753   : > { %v1590_v43 = vpop.f32.mrf.mxu1 }
 0x754   : > { %v1591_v44 = vadd.f32 %v2101_v24, %v1590_v43 }
 0x756   : > { %v1595_v45 = vadd.f32 %v1591_v44, %v2469_v9 }
 0x758   : > { %v1599_v8 = vsel %vm871_vm1, %v1595_v45, 0.0 }
 0x759   : > { %1600 = vadd.xlane.f32.xlu0 %v1599_v8 }
 0x75b   : > { %v1592_v14 = vpop.f32.mrf.mxu1 }
 0x75c   : > { %v1593_v21 = vadd.f32 %v2101_v24, %v1592_v14 }
 0x75e   : > { %v1596_v46 = vadd.f32 %v1593_v21, %v2471_v10 }
 0x760   : > { %v1602_v47 = vsel %vm871_vm1, %v1596_v46, 0.0 }
 0x761   : > { %1603 = vadd.xlane.f32.xlu1 %v1602_v47 }
 0x7cc   : > { %v1601_v48 = vpop.xlane.xlu0 %1600 }
 0x7cd   : > { %v1605_v49 = vmul.f32 %v1601_v48, %v2449_v35 }
 0x7cf   : > { %v1607_v50 = vsub.f32 %v1595_v45, %v1605_v49 }
 0x7d1   : > { %v1609_v51 = vmul.f32 %v1607_v50, %v1607_v50 }
 0x7d3   : > { %v1611_v52 = vsel %vm871_vm1, %v1609_v51, 0.0 }
 0x7d4   : > { %v1604_v53 = vpop.xlane.xlu1 %1603  ;;  %1612 = vadd.xlane.f32.xlu2 %v1611_v52 }
 0x7d5   : > { %v1606_v9 = vmul.f32 %v1604_v53, %v2449_v35 }
 0x7d7   : > { %v1608_v54 = vsub.f32 %v1596_v46, %v1606_v9 }
 0x7d9   : > { %v1610_v55 = vmul.f32 %v1608_v54, %v1608_v54 }
 0x7db   : > { %v1614_v56 = vsel %vm871_vm1, %v1610_v55, 0.0 }
 0x7dc   : > { %1615 = vadd.xlane.f32.xlu0 %v1614_v56 }
 0x847   : > { %v1613_v10 = vpop.xlane.xlu2 %1612 }
 0x848   : > { %v1617_v28 = vmul.f32 %v1613_v10, %v2449_v35 }
 0x84a   : > { %v1619_v29 = vadd.f32 1e-05, %v1617_v28 }
 0x84c   : > { %2130 = vrsqrt.f32 %v1619_v29  ;;  %vm1627_vm8 = vweird.f32 %v1619_v29 }
 0x84f   : > { %v1616_v57 = vpop.xlane.xlu0 %1615 }
 0x850   : > { %v1618_v58 = vmul.f32 %v1616_v57, %v2449_v35 }
 0x852   : > { %v2131_v59 = vpop.eup %2130  ;;  %v1620_v60 = vadd.f32 1e-05, %v1618_v58 }
 0x853   : > { %v1622_v61 = vmul.f32 %v2131_v59, %v1619_v29  ;;  %vm1628_vm7 = vweird.f32 %v2131_v59 }
 0x854   : > { %2132 = vrsqrt.f32 %v1620_v60  ;;  %vm1629_vm9 = vmor %vm1627_vm8, %vm1628_vm7  ;;  %vm1637_vm11 = vweird.f32 %v1620_v60 }
 0x855   : > { %v1623_v62 = vmul.f32 %v2131_v59, %v1622_v61 }
 0x857   : > { %v1624_v63 = vmul.f32 0.5, %v1623_v62 }
 0x859   : > { %v1625_v0 = vsub.f32 1.5, %v1624_v63 }
 0x85a   : > { %v2133_v1 = vpop.eup %2132 }
 0x85b   : > { %v1626_v2 = vmul.f32 %v2131_v59, %v1625_v0  ;;  %v1632_v3 = vmul.f32 %v2133_v1, %v1620_v60  ;;  %vm1638_vm10 = vweird.f32 %v2133_v1 }
 0x85c   : > { %vm1639_vm12 = vmor %vm1637_vm11, %vm1638_vm10 }
 0x85d   : > { %v1630_v35 = vsel %vm1629_vm9, %v2131_v59, %v1626_v2  ;;  %v1633_v7 = vmul.f32 %v2133_v1, %v1632_v3 }
 0x85e   : > { %v1641_v12 = vmul.f32 %v1630_v35, %v1607_v50 }
 0x85f   : > { %v1634_v13 = vmul.f32 0.5, %v1633_v7 }
 0x860   : > { %v1646_v16 = vmul.f32 %v2102_v6, %v1641_v12 }
 0x861   : > { %v1635_v18 = vsub.f32 1.5, %v1634_v13 }
 0x862   : > { %v1651_v19 = vadd.f32 %v2103_v11, %v1646_v16 }
 0x863   : > { %v1636_v20 = vmul.f32 %v2133_v1, %v1635_v18 }
 0x864   : > { %1653 = vst.msk [vmem:[#allocation2] sm:$0xff] %vm871_vm1, %v1651_v19 }
 0x865   : > { %v1640_v22 = vsel %vm1639_vm12, %v2133_v1, %v1636_v20 }
 0x866   : > { %v1642_v17 = vmul.f32 %v1640_v22, %v1608_v54 }
 0x868   : > { %v1647_v23 = vmul.f32 %v2102_v6, %v1642_v17  ;;  %1658 = sbr.rel (%p2035_p6) target bundleno = 2159 (0x86f), region = 96 }
 0x86a   : > { %v1652_v25 = vadd.f32 %v2103_v11, %v1647_v23 }
 0x86c   : > { %1654 = vst.msk [vmem:[#allocation2 + $0x8] sm:$0xff] %vm871_vm1, %v1652_v25 }
 0x86d   : > { %1659 = vst.msk [vmem:[%s2608_s26] sm:$0xff] %vm871_vm1, %v1651_v19 }
 0x86e   : > { %1660 = vst.msk [vmem:[%s2609_s11 + $0x8] sm:$0xff] %vm871_vm1, %v1652_v25 }
 0x86f PF: > { %s2610_s21 = sld [smem:[#allocation5_spill]] }
 0x870   : > { %s2611_s24 = sld [smem:[#allocation4_spill]] }
 0x871   : > { %s2612_s25 = sld [smem:[#allocation6_spill]] }
 0x875   : > { %s27_s26 = sadd.s32 1, %s2610_s21  }
 0x876   : > { %p24_p7 = scmp.ge.s32.totalorder %s27_s26, 4  }
 0x878   :  { %26 = sbr.rel (!%p24_p7) target bundleno = 11 (0xb), region = 181 }

</bundles_post_ra>
